<compile_context>
chip_gen: v6e
topology: v6e:2x2x1
jax: 0.10.0
libtpu: 0.0.40
codegen_flags: <defaults>
</compile_context>

<pallas_src>
import numpy as np
import jax
import jax.numpy as jnp
from jax.experimental import pallas as pl
from jax.experimental.pallas import tpu as pltpu


def _predictor_kernel(x_ref, w1_ref, b1_ref, w2_ref, b2_ref, o_ref):
    """Fused deconv(k=2,s=2) -> bias -> relu -> 1x1 conv -> bias.

    x_ref : (TM, C_in)      rows = flattened (n, h, w) pixels        [bf16/f32]
    w1_ref: (C_in, 4*D)     tap-major deconv weights, col = p*D + d  [bf16/f32]
    b1_ref: (1, 4*D)        deconv bias tiled per tap                [f32]
    w2_ref: (D, NCP)        1x1 conv weights, classes lane-padded    [bf16/f32]
    b2_ref: (1, NCP)                                                 [f32]
    o_ref : (TM, 4*NCP)     per-tap 128-aligned lane slices (dense vst)
    """
    d4 = w1_ref.shape[1]
    d = d4 // 4
    ncp = w2_ref.shape[1]
    tm = x_ref.shape[0]

    # One long MXU pass for all 4 deconv taps: (TM, C) @ (C, 4D), f32 accum.
    t = jnp.dot(x_ref[...], w1_ref[...], preferred_element_type=jnp.float32)
    t = jnp.maximum(t + b1_ref[...], 0.0)            # bias + relu once, in f32
    t = t.astype(w2_ref.dtype)                        # bf16 feed for 2nd MXU pass

    w2 = w2_ref[...]
    b2 = jnp.broadcast_to(b2_ref[...], (tm, ncp))     # hoisted (no per-tap bcast)

    for p in range(4):                                # static unroll over taps
        o = jnp.dot(t[:, p * d:(p + 1) * d], w2,
                    preferred_element_type=jnp.float32) + b2
        o_ref[:, p * ncp:(p + 1) * ncp] = o.astype(o_ref.dtype)


def mask_rcnn_c4_predictor(x, w1, b1, w2, b2, *, tile_m=256,
                           compute_dtype=jnp.bfloat16,
                           out_dtype=jnp.float32,
                           input_channels_last=False,
                           channels_last=False):
    """Forward pass of MaskRCNNC4Predictor (conv-transpose + relu + 1x1 conv).

    x : (N, C_in, H, W) f32  — or (N, H, W, C_in) if input_channels_last=True
        (skips the NCHW->rows repack HBM pass for NHWC producers).
    w1: ConvTranspose2d weight, (C_in, D, 2, 2);  b1: (D,)
    w2: Conv2d(1x1) weight, (NumCls, D, 1, 1);    b2: (NumCls,)
    Returns logits (N, NumCls, 2H, 2W) like the PyTorch module, or
    (N, 2H, 2W, NumCls) if channels_last=True (skips the NCHW repack).
    """
    if input_channels_last:
        N, H, W, C_in = x.shape
        x_rows = x.reshape(N * H * W, C_in)
    else:
        N, C_in, H, W = x.shape
        x_rows = jnp.transpose(x, (0, 2, 3, 1)).reshape(N * H * W, C_in)
    x_rows = x_rows.astype(compute_dtype)

    D = w1.shape[1]
    NC = w2.shape[0]
    NCP = 128 * pl.cdiv(NC, 128)          # lane-pad classes to 128 (keep at 128)
    M = N * H * W

    # Grid sizing: only pad rows when needed; round block count up to even so
    # v7x's two TensorCores split the "parallel" axis evenly.
    nblocks = pl.cdiv(M, tile_m)
    if nblocks > 1 and nblocks % 2 == 1:
        nblocks += 1
    M_pad = nblocks * tile_m
    if M_pad != M:
        x_rows = jnp.pad(x_rows, ((0, M_pad - M), (0, 0)))

    # Tap-major deconv weights: col p*D + d = w1[c, d, kh, kw], p = kh*2 + kw.
    w1_flat = jnp.transpose(w1, (0, 2, 3, 1)).reshape(C_in, 4 * D)
    w1_flat = w1_flat.astype(compute_dtype)
    b1_row = jnp.tile(b1.astype(jnp.float32), 4).reshape(1, 4 * D)

    # 1x1 conv as (D, NCP); classes beyond NC are zero columns.
    w2_mat = jnp.transpose(w2.reshape(NC, D), (1, 0))                 # (D, NC)
    w2_pad = jnp.pad(w2_mat, ((0, 0), (0, NCP - NC))).astype(compute_dtype)
    b2_row = jnp.pad(b2.astype(jnp.float32), (0, NCP - NC)).reshape(1, NCP)

    flops = 2 * M_pad * (4 * C_in * D + 4 * D * NCP)
    bytes_accessed = int(
        x_rows.size * x_rows.dtype.itemsize
        + w1_flat.size * w1_flat.dtype.itemsize
        + w2_pad.size * w2_pad.dtype.itemsize
        + M_pad * 4 * NCP * np.dtype(out_dtype).itemsize)

    out_rows = pl.pallas_call(
        _predictor_kernel,
        out_shape=jax.ShapeDtypeStruct((M_pad, 4 * NCP), out_dtype),
        grid_spec=pltpu.PrefetchScalarGridSpec(
            num_scalar_prefetch=0,
            grid=(nblocks,),
            in_specs=[
                pl.BlockSpec((tile_m, C_in), lambda i: (i, 0)),
                # Constant-index operands: single-buffered (no prefetch needed).
                pl.BlockSpec((C_in, 4 * D), lambda i: (0, 0),
                             pipeline_mode=pl.Buffered(1)),
                pl.BlockSpec((1, 4 * D), lambda i: (0, 0),
                             pipeline_mode=pl.Buffered(1)),
                pl.BlockSpec((D, NCP), lambda i: (0, 0),
                             pipeline_mode=pl.Buffered(1)),
                pl.BlockSpec((1, NCP), lambda i: (0, 0),
                             pipeline_mode=pl.Buffered(1)),
            ],
            out_specs=pl.BlockSpec((tile_m, 4 * NCP), lambda i: (i, 0)),
        ),
        compiler_params=pltpu.CompilerParams(
            dimension_semantics=("parallel",),
            # 48 MiB: above v5e's 16 MiB default scoped limit, below v7x's
            # 64 MiB physical VMEM so double-buffered x/out DMA still fits.
            vmem_limit_bytes=48 * 1024 * 1024),
        cost_estimate=pl.CostEstimate(flops=flops, transcendentals=0,
                                      bytes_accessed=bytes_accessed),
    )(x_rows, w1_flat, b1_row, w2_pad, b2_row)

    # Unpad rows + classes; column index = p*NCP + class, p = kh*2 + kw.
    # (Padded rows/classes are junk/zero and MUST be sliced off here.)
    out = out_rows[:M].reshape(N, H, W, 2, 2, NCP)[..., :NC]
    if channels_last:
        # (N, H, kh, W, kw, NC) -> (N, 2H, 2W, NC): skips the NCHW repack pass.
        return jnp.transpose(out, (0, 1, 3, 2, 4, 5)).reshape(N, 2 * H, 2 * W, NC)
    # NCHW to match the PyTorch module's return layout (slice+transpose fuse
    # into a single XLA copy).
    out = jnp.transpose(out, (0, 5, 1, 3, 2, 4)).reshape(N, NC, 2 * H, 2 * W)
    return out


def _reference(x, w1, b1, w2, b2):
    # Pure-JAX f32 reference for the same forward pass.
    N, C_in, H, W = x.shape
    NC = w2.shape[0]
    # ConvTranspose2d(k=2, s=2, p=0): each pixel emits a 2x2 block.
    y = jnp.einsum('nchw,coab->nohawb', x, w1)                 # (N,D,H,2,W,2)
    y = y.reshape(N, w1.shape[1], 2 * H, 2 * W) + b1[None, :, None, None]
    y = jnp.maximum(y, 0.0)
    logits = jnp.einsum('ndhw,kd->nkhw', y, w2.reshape(NC, -1))
    return logits + b2[None, :, None, None]


if __name__ == "__main__":
    # Small, module-consistent shapes: in_channels=8, dim_reduced=16,
    # num_classes=8, batch=2, spatial 16x16 (mask head RoI features).
    N, C_IN, H, W = 2, 8, 16, 16
    DIM_REDUCED = 16
    NUM_CLASSES = 8

    key = jax.random.PRNGKey(0)
    k_x, k_w1, k_w2 = jax.random.split(key, 3)

    x = jax.random.normal(k_x, (N, C_IN, H, W), dtype=jnp.float32)

    # Deterministic kaiming_normal_(mode='fan_out', nonlinearity='relu'):
    # std = sqrt(2 / fan_out); biases initialized to 0 (as in the module).
    fan_out_w1 = DIM_REDUCED * 2 * 2
    w1 = jax.random.normal(k_w1, (C_IN, DIM_REDUCED, 2, 2),
                           dtype=jnp.float32) * jnp.sqrt(2.0 / fan_out_w1)
    b1 = jnp.zeros((DIM_REDUCED,), dtype=jnp.float32)

    fan_out_w2 = NUM_CLASSES * 1 * 1
    w2 = jax.random.normal(k_w2, (NUM_CLASSES, DIM_REDUCED, 1, 1),
                           dtype=jnp.float32) * jnp.sqrt(2.0 / fan_out_w2)
    b2 = jnp.zeros((NUM_CLASSES,), dtype=jnp.float32)

    ref = _reference(x, w1, b1, w2, b2)

    # 1) f32 compute path: exact check against the reference.
    out_f32 = mask_rcnn_c4_predictor(x, w1, b1, w2, b2, tile_m=256,
                                     compute_dtype=jnp.float32)
    out_f32 = jax.block_until_ready(out_f32)
    assert out_f32.shape == (N, NUM_CLASSES, 2 * H, 2 * W), out_f32.shape
    assert jnp.allclose(out_f32, ref, atol=1e-4, rtol=1e-4), "f32 mismatch"

    # 2) Default bf16-MXU path (f32 accumulation): looser tolerance.
    out_bf16 = mask_rcnn_c4_predictor(x, w1, b1, w2, b2, tile_m=256)
    out_bf16 = jax.block_until_ready(out_bf16)
    assert jnp.allclose(out_bf16, ref, atol=3e-2, rtol=3e-2), "bf16 mismatch"

    # 3) NHWC in / channels_last out, tile_m that does not divide M (exercises
    #    row padding + even-grid-step rounding).  Same numbers.
    x_nhwc = jnp.transpose(x, (0, 2, 3, 1))
    out_cl = mask_rcnn_c4_predictor(x_nhwc, w1, b1, w2, b2, tile_m=192,
                                    input_channels_last=True,
                                    channels_last=True)
    out_cl = jax.block_until_ready(out_cl)
    assert jnp.allclose(out_cl, jnp.transpose(ref, (0, 2, 3, 1)),
                        atol=3e-2, rtol=3e-2), "channels_last mismatch"

    # TODO(synk): the FALKON classifier branches (predict_pixel_FALKON*) depend
    # on externally-trained kernel classifiers and are not part of the plain
    # forward pass; only the conv-transpose + relu + 1x1-conv path is kernelized.
    print("KERNEL_OK")
</pallas_src>

<mosaic_0001>
module attributes {stable_mosaic.version = 11 : i64} {
  func.func @_predictor_kernel(%arg0: i32, %arg1: memref<256x8xf32, #tpu.memory_space<vmem>>, %arg2: memref<8x64xf32, #tpu.memory_space<vmem>>, %arg3: memref<1x64xf32, #tpu.memory_space<vmem>>, %arg4: memref<16x128xf32, #tpu.memory_space<vmem>>, %arg5: memref<1x128xf32, #tpu.memory_space<vmem>>, %arg6: memref<256x512xf32, #tpu.memory_space<vmem>>) attributes {dimension_semantics = [#tpu.dimension_semantics<parallel>], iteration_bounds = array<i64: 2>, scalar_prefetch = 0 : i64, scratch_operands = 0 : i64, tpu.core_type = #tpu.core_type<tc>, window_params = [{transform_indices = @transform_0, window_bounds = array<i64: 256, 8>}, {pipeline_mode = #tpu.pipeline_mode<synchronous>, transform_indices = @transform_1, window_bounds = array<i64: 8, 64>}, {pipeline_mode = #tpu.pipeline_mode<synchronous>, transform_indices = @transform_2, window_bounds = array<i64: 1, 64>}, {pipeline_mode = #tpu.pipeline_mode<synchronous>, transform_indices = @transform_3, window_bounds = array<i64: 16, 128>}, {pipeline_mode = #tpu.pipeline_mode<synchronous>, transform_indices = @transform_4, window_bounds = array<i64: 1, 128>}, {transform_indices = @transform_5, window_bounds = array<i64: 256, 512>}]} {
    %c0 = arith.constant 0 : index
    %c0_0 = arith.constant 0 : index
    %0 = vector.load %arg1[%c0, %c0_0] : memref<256x8xf32, #tpu.memory_space<vmem>>, vector<256x8xf32>
    %c0_1 = arith.constant 0 : index
    %c0_2 = arith.constant 0 : index
    %1 = vector.load %arg2[%c0_1, %c0_2] : memref<8x64xf32, #tpu.memory_space<vmem>>, vector<8x64xf32>
    %cst = arith.constant dense<0.000000e+00> : vector<256x64xf32>
    %2 = tpu.matmul %0, %1, %cst {dimension_numbers = #tpu.dot_dimension_numbers<[1], [0], [0], [1], [0, 0, 1, 1], [], []>} : vector<256x8xf32>, vector<8x64xf32>, vector<256x64xf32> -> vector<256x64xf32>
    %c0_3 = arith.constant 0 : index
    %c0_4 = arith.constant 0 : index
    %3 = vector.load %arg3[%c0_3, %c0_4] : memref<1x64xf32, #tpu.memory_space<vmem>>, vector<1x64xf32>
    %4 = vector.broadcast %3 : vector<1x64xf32> to vector<256x64xf32>
    %5 = arith.addf %2, %4 : vector<256x64xf32>
    %cst_5 = arith.constant 0.000000e+00 : f32
    %6 = vector.broadcast %cst_5 : f32 to vector<256x64xf32>
    %7 = arith.maximumf %5, %6 : vector<256x64xf32>
    %c0_6 = arith.constant 0 : index
    %c0_7 = arith.constant 0 : index
    %8 = vector.load %arg4[%c0_6, %c0_7] : memref<16x128xf32, #tpu.memory_space<vmem>>, vector<16x128xf32>
    %c0_8 = arith.constant 0 : index
    %c0_9 = arith.constant 0 : index
    %9 = vector.load %arg5[%c0_8, %c0_9] : memref<1x128xf32, #tpu.memory_space<vmem>>, vector<1x128xf32>
    %10 = vector.shape_cast %9 : vector<1x128xf32> to vector<1x128xf32>
    %11 = vector.broadcast %10 : vector<1x128xf32> to vector<256x128xf32>
    %12 = vector.extract_strided_slice %7 {offsets = [0, 0], sizes = [256, 16], strides = [1, 1]} : vector<256x64xf32> to vector<256x16xf32>
    %cst_10 = arith.constant dense<0.000000e+00> : vector<256x128xf32>
    %13 = tpu.matmul %12, %8, %cst_10 {dimension_numbers = #tpu.dot_dimension_numbers<[1], [0], [0], [1], [0, 0, 1, 1], [], []>} : vector<256x16xf32>, vector<16x128xf32>, vector<256x128xf32> -> vector<256x128xf32>
    %14 = arith.addf %13, %11 : vector<256x128xf32>
    %c0_11 = arith.constant 0 : index
    %c0_12 = arith.constant 0 : index
    %15 = vector.load %arg6[%c0_11, %c0_12] : memref<256x512xf32, #tpu.memory_space<vmem>>, vector<256x128xf32>
    tpu.vector_store %arg6[%c0_11, %c0_12], %14 {strides = array<i32>} : memref<256x512xf32, #tpu.memory_space<vmem>>, vector<256x128xf32>,
    %16 = vector.extract_strided_slice %7 {offsets = [0, 16], sizes = [256, 16], strides = [1, 1]} : vector<256x64xf32> to vector<256x16xf32>
    %cst_13 = arith.constant dense<0.000000e+00> : vector<256x128xf32>
    %17 = tpu.matmul %16, %8, %cst_13 {dimension_numbers = #tpu.dot_dimension_numbers<[1], [0], [0], [1], [0, 0, 1, 1], [], []>} : vector<256x16xf32>, vector<16x128xf32>, vector<256x128xf32> -> vector<256x128xf32>
    %18 = arith.addf %17, %11 : vector<256x128xf32>
    %c0_14 = arith.constant 0 : index
    %c128 = arith.constant 128 : index
    %19 = vector.load %arg6[%c0_14, %c128] : memref<256x512xf32, #tpu.memory_space<vmem>>, vector<256x128xf32>
    tpu.vector_store %arg6[%c0_14, %c128], %18 {strides = array<i32>} : memref<256x512xf32, #tpu.memory_space<vmem>>, vector<256x128xf32>,
    %20 = vector.extract_strided_slice %7 {offsets = [0, 32], sizes = [256, 16], strides = [1, 1]} : vector<256x64xf32> to vector<256x16xf32>
    %cst_15 = arith.constant dense<0.000000e+00> : vector<256x128xf32>
    %21 = tpu.matmul %20, %8, %cst_15 {dimension_numbers = #tpu.dot_dimension_numbers<[1], [0], [0], [1], [0, 0, 1, 1], [], []>} : vector<256x16xf32>, vector<16x128xf32>, vector<256x128xf32> -> vector<256x128xf32>
    %22 = arith.addf %21, %11 : vector<256x128xf32>
    %c0_16 = arith.constant 0 : index
    %c256 = arith.constant 256 : index
    %23 = vector.load %arg6[%c0_16, %c256] : memref<256x512xf32, #tpu.memory_space<vmem>>, vector<256x128xf32>
    tpu.vector_store %arg6[%c0_16, %c256], %22 {strides = array<i32>} : memref<256x512xf32, #tpu.memory_space<vmem>>, vector<256x128xf32>,
    %24 = vector.extract_strided_slice %7 {offsets = [0, 48], sizes = [256, 16], strides = [1, 1]} : vector<256x64xf32> to vector<256x16xf32>
    %cst_17 = arith.constant dense<0.000000e+00> : vector<256x128xf32>
    %25 = tpu.matmul %24, %8, %cst_17 {dimension_numbers = #tpu.dot_dimension_numbers<[1], [0], [0], [1], [0, 0, 1, 1], [], []>} : vector<256x16xf32>, vector<16x128xf32>, vector<256x128xf32> -> vector<256x128xf32>
    %26 = arith.addf %25, %11 : vector<256x128xf32>
    %c0_18 = arith.constant 0 : index
    %c384 = arith.constant 384 : index
    %27 = vector.load %arg6[%c0_18, %c384] : memref<256x512xf32, #tpu.memory_space<vmem>>, vector<256x128xf32>
    tpu.vector_store %arg6[%c0_18, %c384], %26 {strides = array<i32>} : memref<256x512xf32, #tpu.memory_space<vmem>>, vector<256x128xf32>,
    return
  }
  func.func @transform_0(%arg0: i32) -> (i32, i32) {
    %c0_i32 = arith.constant 0 : i32
    %c0_i32_0 = arith.constant 0 : i32
    return %arg0, %c0_i32 : i32, i32
  }
  func.func @transform_1(%arg0: i32) -> (i32, i32) {
    %c0_i32 = arith.constant 0 : i32
    %c0_i32_0 = arith.constant 0 : i32
    %c0_i32_1 = arith.constant 0 : i32
    return %c0_i32, %c0_i32_0 : i32, i32
  }
  func.func @transform_2(%arg0: i32) -> (i32, i32) {
    %c0_i32 = arith.constant 0 : i32
    %c0_i32_0 = arith.constant 0 : i32
    %c0_i32_1 = arith.constant 0 : i32
    return %c0_i32, %c0_i32_0 : i32, i32
  }
  func.func @transform_3(%arg0: i32) -> (i32, i32) {
    %c0_i32 = arith.constant 0 : i32
    %c0_i32_0 = arith.constant 0 : i32
    %c0_i32_1 = arith.constant 0 : i32
    return %c0_i32, %c0_i32_0 : i32, i32
  }
  func.func @transform_4(%arg0: i32) -> (i32, i32) {
    %c0_i32 = arith.constant 0 : i32
    %c0_i32_0 = arith.constant 0 : i32
    %c0_i32_1 = arith.constant 0 : i32
    return %c0_i32, %c0_i32_0 : i32, i32
  }
  func.func @transform_5(%arg0: i32) -> (i32, i32) {
    %c0_i32 = arith.constant 0 : i32
    %c0_i32_0 = arith.constant 0 : i32
    return %arg0, %c0_i32 : i32, i32
  }
}

</mosaic_0001>

<bundles_post_ra>
// kernel: tpu_custom_call.1
= control target key start
LH: loop header
LB: loop body
LE: loop exit
PB: predicated region body
PF: predicated region fallthrough
CT: control target
= control target key end

     0   :  { %10 = vsyncpa [#allocation3], 0  ;;  %s3963_s0 = inlined_call_operand.vmem [shape: f32[512,8], index: 0, kind: input, shape index: {}]   ;;  %s3964_s1 = inlined_call_operand.vmem [shape: f32[8,64], index: 1, kind: input, shape index: {}]   ;;  %s3965_s2 = inlined_call_operand.vmem [shape: f32[1,64], index: 2, kind: input, shape index: {}]   ;;  %s3966_s3 = inlined_call_operand.vmem [shape: f32[16,128], index: 3, kind: input, shape index: {}]   ;;  %s3967_s4 = inlined_call_operand.vmem [shape: f32[1,128], index: 4, kind: input, shape index: {}]   ;;  %s3968_s5 = inlined_call_operand.hbm [shape: f32[512,512], index: 5, kind: output, shape index: {}]  }
   0x1   :  { %12 = vsyncpa [#allocation3 + $0x1], 0  ;;  %s2964_s18 = smov 0   ;;  %s2966_s19 = smov 0  }
   0x2   :  { %s2968_s20 = smov 0   ;;  %s2970_s21 = smov 0  }
   0x3 LB: > { %s2985_s22 = sadd.s32 4294967295, %s2926_s21   ;;  %s2215_s23 = sadd.s32 4294967294, %s2926_s21   ;;  %s2926_s21 = sphi %s2970_s21, %s3974_s21   ;;  %s2922_s20 = sphi %s2968_s20, %s3973_s20   ;;  %s2918_s19 = sphi %s2966_s19, %s3972_s19   ;;  %s2914_s18 = sphi %s2964_s18, %s3971_s18  }
   0x4   : > { %s2989_s24 = sadd.s32 1, %s2926_s21   ;;  %s135_s25 = sadd.s32 1, %s2922_s20 }
   0x5   : > { %s132_s26 = ssub.s32 %s2926_s21, %s2989_s24  ;;  %p145_p0 = scmp.ne.s32.totalorder %s2922_s20, %s2918_s19 }
   0x6   : > { %p133_p1 = scmp.eq.s32.totalorder %s132_s26, 0  ;;  %p146_p2 = scmp.eq.s32.totalorder %s2985_s22, 1 }
   0x7   : > { %p151_p3 = scmp.ne.s32.totalorder %s2918_s19, %s2914_s18  ;;  %p152_p4 = scmp.eq.s32.totalorder %s2215_s23, 1 }
   0x8   : > { %s3000_s27 = scalar_select %p133_p1, %s2922_s20, %s135_s25  }
   0x9   : > { %p3002_p5 = por %p146_p2, %p145_p0  ;;  %p3006_p6 = por %p152_p4, %p151_p3 }
   0xa   : > { %p2218_p7 = scmp.ge.s32.totalorder %s2926_s21, 1  ;;  %p191_p8 = scmp.lt.s32.totalorder %s2926_s21, 3 }
   0xc   : > { %p192_p9 = pnand %p2218_p7, %p191_p8 }
   0xd   : > { %s2220_s7 = sshll.u32 (!%p192_p9), %s2985_s22, 5  ;;  %s2928_s23 = smov (!%p192_p9), 112  }
   0xe   : > { %195 = sbr.rel (%p192_p9) target bundleno = 736 (0x2e0), region = 40  ;;  %p220_p10 = scmp.lt.s32.totalorder (!%p192_p9), %s2220_s7, 63 }
   0xf   : > { %s2929_s25 = smov (!%p192_p9), 80   ;;  %s2930_s26 = smov (!%p192_p9), 96  }
  0x10   : > { %s216_s30 = sand.u32 (!%p192_p9), 1, %s2918_s19   ;;  %s2391_s10 = sshll.u32 (!%p192_p9), %s2985_s22, 14 }
  0x11   : > { %s2219_s6 = sshll.u32 (!%p192_p9), %s216_s30, 10  ;;  %s3910_s14 = scalar_lea.hbm (!%p192_p9), %s3968_s5, %s2391_s10 }
  0x12   : > { %s3521_s9 = scalar_lea.vmem (!%p192_p9), [#allocation2], %s2219_s6  ;;  %s3923_s16 = scalar_lea.sflag (!%p192_p9), [#allocation3], %s216_s30 }
  0x13   : > { %v258_v0 = vld [vmem:[%s3964_s1] sm:$0xff]  ;;  %s3976_s7 = smov (!%p220_p10, %s2220_s7), 63  ;;  %vm266_vm0 = vcmask 64512   ;;  %v3088_v33 = vld [vmem:[%s3966_s3 + $0x8] sm:$0xff]  ;;  %vm629_vm1 = vcmask 130048  }
  0x14   : > { %2561 = vmatprep.subr.mxu0 %v258_v0  ;;  %2819 = vmatprep.subr.mxu1 %v258_v0  ;;  %s2221_s8 = sshll.u32 %s3976_s7, 3  ;;  %v3096_v34 = vld [vmem:[%s3966_s3] sm:$0xff] }
  0x15   : > { %2562 = vmatpush3.msra.mxu0 %v258_v0  ;;  %2820 = vmatpush3.msra.mxu1 %v258_v0  ;;  %s3019_s11 = scalar_lea.vmem %s3963_s0, %s2221_s8  ;;  %v3108_v35 = vld [vmem:[%s3965_s2] ss:$0 sm:$0xff] }
  0x16   : > { %v226_v1 = vld [vmem:[%s3019_s11] sm:$0xff]  ;;  %v227_v3 = vld [vmem:[%s3019_s11 + $0x8] sm:$0xff]  ;;  %v228_v5 = vld [vmem:[%s3019_s11 + $0x10] sm:$0xff]  ;;  %2611 = vmatprep.subr.mxu1 %v3088_v33  ;;  %2663 = vmatprep.subr.mxu0 %v3088_v33 }
  0x17   : > { %v242_v2 = vld [vmem:[%s3019_s11 + $0x80] sm:$0xff]  ;;  %2563 = vmatprep.mubr.msk.f32.mxu0 %vm266_vm0, %v226_v1  ;;  %v243_v4 = vld [vmem:[%s3019_s11 + $0x88] sm:$0xff]  ;;  %v229_v6 = vld [vmem:[%s3019_s11 + $0x18] sm:$0xff] }
  0x18   : > { %2587 = vmatprep.mubr.msk.f32.mxu1 %vm266_vm0, %v242_v2  ;;  %2564 = vmatmul.mubr.msk.f32.vlgmr.msra.gmra.mxu0 %vm266_vm0, %v227_v3  ;;  %v244_v7 = vld [vmem:[%s3019_s11 + $0x90] sm:$0xff]  ;;  %v245_v8 = vld [vmem:[%s3019_s11 + $0x98] sm:$0xff]  ;;  %v230_v9 = vld [vmem:[%s3019_s11 + $0x20] sm:$0xff] }
  0x19   : > { %2588 = vmatmul.mubr.msk.f32.vlgmr.msra.gmra.mxu1 %vm266_vm0, %v243_v4  ;;  %2566 = vmatprep.mubr.msk.f32.mxu0 %vm266_vm0, %v228_v5  ;;  %v246_v10 = vld [vmem:[%s3019_s11 + $0xa0] sm:$0xff]  ;;  %v231_v11 = vld [vmem:[%s3019_s11 + $0x28] sm:$0xff]  ;;  %v232_v13 = vld [vmem:[%s3019_s11 + $0x30] sm:$0xff] }
  0x1a   : > { %2590 = vmatprep.mubr.msk.f32.mxu1 %vm266_vm0, %v244_v7  ;;  %v247_v12 = vld [vmem:[%s3019_s11 + $0xa8] sm:$0xff]  ;;  %v248_v14 = vld [vmem:[%s3019_s11 + $0xb0] sm:$0xff]  ;;  %v233_v15 = vld [vmem:[%s3019_s11 + $0x38] sm:$0xff]  ;;  %2612 = vmatpush3.msra.mxu1 %v3088_v33 }
  0x1b   : > { %v249_v16 = vld [vmem:[%s3019_s11 + $0xb8] sm:$0xff]  ;;  %v234_v17 = vld [vmem:[%s3019_s11 + $0x40] sm:$0xff]  ;;  %v235_v19 = vld [vmem:[%s3019_s11 + $0x48] sm:$0xff]  ;;  %2664 = vmatpush3.msra.mxu0 %v3088_v33  ;;  %2613 = vmatprep.subr.mxu1 %v3096_v34 }
  0x1c   : > { %2567 = vmatmul.mubr.msk.f32.gmra.mxu0 %vm266_vm0, %v229_v6  ;;  %v250_v18 = vld [vmem:[%s3019_s11 + $0xc0] sm:$0xff]  ;;  %v251_v20 = vld [vmem:[%s3019_s11 + $0xc8] sm:$0xff]  ;;  %v236_v21 = vld [vmem:[%s3019_s11 + $0x50] sm:$0xff]  ;;  %2665 = vmatprep.subr.mxu0 %v3096_v34 }
  0x1d   : > { %2591 = vmatmul.mubr.msk.f32.gmra.mxu1 %vm266_vm0, %v245_v8  ;;  %2569 = vmatprep.mubr.msk.f32.mxu0 %vm266_vm0, %v230_v9  ;;  %v252_v22 = vld [vmem:[%s3019_s11 + $0xd0] sm:$0xff]  ;;  %v237_v23 = vld [vmem:[%s3019_s11 + $0x58] sm:$0xff]  ;;  %v238_v25 = vld [vmem:[%s3019_s11 + $0x60] sm:$0xff] }
  0x1e   : > { %2593 = vmatprep.mubr.msk.f32.mxu1 %vm266_vm0, %v246_v10  ;;  %v253_v24 = vld [vmem:[%s3019_s11 + $0xd8] sm:$0xff]  ;;  %v254_v26 = vld [vmem:[%s3019_s11 + $0xe0] sm:$0xff]  ;;  %v239_v27 = vld [vmem:[%s3019_s11 + $0x68] sm:$0xff]  ;;  %2614 = vmatpush3.msra.mxu1 %v3096_v34 }
  0x1f   : > { %v255_v28 = vld [vmem:[%s3019_s11 + $0xe8] sm:$0xff]  ;;  %v240_v29 = vld [vmem:[%s3019_s11 + $0x70] sm:$0xff]  ;;  %v241_v31 = vld [vmem:[%s3019_s11 + $0x78] sm:$0xff]  ;;  %2666 = vmatpush3.msra.mxu0 %v3096_v34  ;;  %2715 = vmatprep.subr.mxu1 %v3088_v33 }
  0x20   : > { %2570 = vmatmul.mubr.msk.f32.gmra.mxu0 %vm266_vm0, %v231_v11  ;;  %v256_v30 = vld [vmem:[%s3019_s11 + $0xf0] sm:$0xff]  ;;  %v257_v32 = vld [vmem:[%s3019_s11 + $0xf8] sm:$0xff]  ;;  %2767 = vmatprep.subr.mxu0 %v3088_v33  ;;  %s2153_s11 = sshll.u32 %s3521_s9, 4  ;;  %s3912_s11 = int_to_ptr.vmem [resolvable:$true] %s2153_s11 }
  0x21   : > { %2594 = vmatmul.mubr.msk.f32.gmra.mxu1 %vm266_vm0, %v247_v12  ;;  %2572 = vmatprep.mubr.msk.f32.mxu0 %vm266_vm0, %v232_v13  ;;  %s2866_s17 = scalar_lea.vmem %s3912_s11, 16384 }
  0x22   : > { %2596 = vmatprep.mubr.msk.f32.mxu1 %vm266_vm0, %v248_v14  ;;  %p2867_p11 = scmp.ne.s32.totalorder %s3912_s11, %s2866_s17 }
  0x24   : > { %2573 = vmatmul.mubr.msk.f32.gmra.mxu0 %vm266_vm0, %v233_v15  ;;  %p2868_p12 = pnand %p2867_p11, %p3002_p5 }
  0x25   : > { %2597 = vmatmul.mubr.msk.f32.gmra.mxu1 %vm266_vm0, %v249_v16  ;;  %2575 = vmatprep.mubr.msk.f32.mxu0 %vm266_vm0, %v234_v17 }
  0x26   : > { %2599 = vmatprep.mubr.msk.f32.mxu1 %vm266_vm0, %v250_v18  ;;  %p2869_p13 = pneg %p2868_p12 }
  0x28   : > { %2576 = vmatmul.mubr.msk.f32.gmra.mxu0 %vm266_vm0, %v235_v19 }
  0x29   : > { %2600 = vmatmul.mubr.msk.f32.gmra.mxu1 %vm266_vm0, %v251_v20  ;;  %2578 = vmatprep.mubr.msk.f32.mxu0 %vm266_vm0, %v236_v21 }
  0x2a   : > { %2602 = vmatprep.mubr.msk.f32.mxu1 %vm266_vm0, %v252_v22 }
  0x2c   : > { %2579 = vmatmul.mubr.msk.f32.gmra.mxu0 %vm266_vm0, %v237_v23 }
  0x2d   : > { %2603 = vmatmul.mubr.msk.f32.gmra.mxu1 %vm266_vm0, %v253_v24  ;;  %2581 = vmatprep.mubr.msk.f32.mxu0 %vm266_vm0, %v238_v25 }
  0x2e   : > { %2605 = vmatprep.mubr.msk.f32.mxu1 %vm266_vm0, %v254_v26 }
  0x30   : > { %2582 = vmatmul.mubr.msk.f32.gmra.mxu0 %vm266_vm0, %v239_v27 }
  0x31   : > { %2606 = vmatmul.mubr.msk.f32.gmra.mxu1 %vm266_vm0, %v255_v28  ;;  %2584 = vmatprep.mubr.msk.f32.mxu0 %vm266_vm0, %v240_v29 }
  0x32   : > { %2608 = vmatprep.mubr.msk.f32.mxu1 %vm266_vm0, %v256_v30 }
  0x34   : > { %2585 = vmatmul.mubr.msk.f32.gmra.mxu0 %vm266_vm0, %v241_v31 }
  0x35   : > { %2609 = vmatmul.mubr.msk.f32.gmra.mxu1 %vm266_vm0, %v257_v32 }
  0xd8   : > { %v2565_v36 = vpop.f32.mrf.mxu0 }
  0xd9   : > { %v2589_v37 = vpop.f32.mrf.mxu1  ;;  %v435_v38 = vadd.f32 %v2565_v36, %v3108_v35 }
  0xda   : > { %v515_v39 = vadd.f32 %v2589_v37, %v3108_v35  ;;  %v429_v40 = vpop.f32.mrf.mxu0 }
  0xdb   : > { %v589_v41 = vmax.f32 %v435_v38, 0.0  ;;  %v430_v43 = vadd.f32 %v3108_v35, %v429_v40  ;;  %v509_v49 = vpop.f32.mrf.mxu1 }
  0xdc   : > { %v3112_v42 = vmax.f32 %v515_v39, 0.0  ;;  %v2568_v44 = vpop.f32.mrf.mxu0  ;;  %v510_v55 = vadd.f32 %v3108_v35, %v509_v49 }
  0xdd   : > { %v588_v45 = vmax.f32 %v430_v43, 0.0  ;;  %v445_v46 = vadd.f32 %v2568_v44, %v3108_v35  ;;  %985 = vrot.lane.b32.xlu0 %v589_v41, %s2928_s23  ;;  %v2592_v59 = vpop.f32.mrf.mxu1 }
  0xde   : > { %1017 = vrot.lane.b32.xlu1 %v3112_v42, %s2928_s23  ;;  %v439_v47 = vpop.f32.mrf.mxu0  ;;  %v525_v62 = vadd.f32 %v2592_v59, %v3108_v35  ;;  %v3143_v0 = vmax.f32 %v510_v55, 0.0 }
  0xdf   : > { %v440_v48 = vadd.f32 %v3108_v35, %v439_v47  ;;  %2615 = vmatprep.mubr.msk.f32.mxu1 %vm629_vm1, %v588_v45  ;;  %v591_v50 = vmax.f32 %v445_v46, 0.0  ;;  %v519_v8 = vpop.f32.mrf.mxu1 }
  0xe0   : > { %v2571_v51 = vpop.f32.mrf.mxu0  ;;  %2616 = vmatmul.mubr.msk.f32.vlgmr.msra.gmra.mxu1 %vm629_vm1, %v589_v41  ;;  %v3154_v5 = vmax.f32 %v525_v62, 0.0  ;;  %v520_v16 = vadd.f32 %v3108_v35, %v519_v8 }
  0xe1   : > { %v3122_v52 = vmax.f32 %v440_v48, 0.0  ;;  %v455_v53 = vadd.f32 %v2571_v51, %v3108_v35  ;;  %1370 = vrot.lane.b32.xlu0 %v589_v41, %s2930_s26  ;;  %2716 = vmatpush3.msra.mxu1 %v3088_v33  ;;  %v2595_v14 = vpop.f32.mrf.mxu1 }
  0xe2   : > { %1755 = vrot.lane.b32.xlu1 %v589_v41, %s2929_s25  ;;  %v449_v54 = vpop.f32.mrf.mxu0  ;;  %2717 = vmatprep.subr.mxu1 %v3096_v34  ;;  %v3186_v24 = vmax.f32 %v520_v16, 0.0  ;;  %v535_v39 = vadd.f32 %v2595_v14, %v3108_v35 }
  0xe3   : > { %v450_v56 = vadd.f32 %v3108_v35, %v449_v54  ;;  %2618 = vmatprep.mubr.msk.f32.mxu1 %vm629_vm1, %v3122_v52  ;;  %v3133_v57 = vmax.f32 %v455_v53, 0.0  ;;  %2718 = vmatpush3.msra.mxu1 %v3096_v34  ;;  %v529_v22 = vpop.f32.mrf.mxu1 }
  0xe4   : > { %v2574_v58 = vpop.f32.mrf.mxu0  ;;  %2619 = vmatmul.mubr.msk.f32.gmra.mxu1 %vm629_vm1, %v591_v50  ;;  %v3220_v41 = vmax.f32 %v535_v39, 0.0  ;;  %v530_v44 = vadd.f32 %v3108_v35, %v529_v22 }
  0xe5   : > { %v3136_v60 = vmax.f32 %v450_v56, 0.0  ;;  %v465_v61 = vadd.f32 %v2574_v58, %v3108_v35  ;;  %983 = vrot.lane.b32.xlu0 %v588_v45, %s2928_s23  ;;  %v2598_v26 = vpop.f32.mrf.mxu1 }
  0xe6   : > { %1753 = vrot.lane.b32.xlu1 %v588_v45, %s2929_s25  ;;  %v459_v63 = vpop.f32.mrf.mxu0  ;;  %v3238_v47 = vmax.f32 %v530_v44, 0.0  ;;  %v545_v49 = vadd.f32 %v2598_v26, %v3108_v35 }
  0xe7   : > { %v460_v1 = vadd.f32 %v3108_v35, %v459_v63  ;;  %2621 = vmatprep.mubr.msk.f32.mxu1 %vm629_vm1, %v3136_v60  ;;  %v3148_v2 = vmax.f32 %v465_v61, 0.0  ;;  %v539_v36 = vpop.f32.mrf.mxu1 }
  0xe8   : > { %v2577_v3 = vpop.f32.mrf.mxu0  ;;  %2622 = vmatmul.mubr.msk.f32.gmra.mxu1 %vm629_vm1, %v3133_v57  ;;  %v540_v46 = vadd.f32 %v3108_v35, %v539_v36  ;;  %v3252_v53 = vmax.f32 %v545_v49, 0.0 }
  0xe9   : > { %v3152_v4 = vmax.f32 %v460_v1, 0.0  ;;  %v475_v6 = vadd.f32 %v2577_v3, %v3108_v35  ;;  %1015 = vrot.lane.b32.xlu0 %v3143_v0, %s2928_s23  ;;  %v2601_v40 = vpop.f32.mrf.mxu1 }
  0xea   : > { %989 = vrot.lane.b32.xlu1 %v591_v50, %s2928_s23  ;;  %v469_v7 = vpop.f32.mrf.mxu0  ;;  %v3249_v51 = vmax.f32 %v540_v46, 0.0  ;;  %v555_v54 = vadd.f32 %v2601_v40, %v3108_v35 }
  0xeb   : > { %v470_v9 = vadd.f32 %v3108_v35, %v469_v7  ;;  %2624 = vmatprep.mubr.msk.f32.mxu1 %vm629_vm1, %v3152_v4  ;;  %v3163_v10 = vmax.f32 %v475_v6, 0.0  ;;  %v549_v43 = vpop.f32.mrf.mxu1 }
  0xec   : > { %v2580_v11 = vpop.f32.mrf.mxu0  ;;  %2625 = vmatmul.mubr.msk.f32.gmra.mxu1 %vm629_vm1, %v3148_v2  ;;  %v3268_v59 = vmax.f32 %v555_v54, 0.0 }
  0xed   : > { %v3167_v12 = vmax.f32 %v470_v9, 0.0  ;;  %v485_v13 = vadd.f32 %v2580_v11, %v3108_v35  ;;  %1368 = vrot.lane.b32.xlu0 %v588_v45, %s2930_s26  ;;  %v2604_v45 = vpop.f32.mrf.mxu1 }
  0xee   : > { %1021 = vrot.lane.b32.xlu1 %v3154_v5, %s2928_s23  ;;  %v479_v15 = vpop.f32.mrf.mxu0  ;;  %v565_v61 = vadd.f32 %v2604_v45, %v3108_v35 }
  0xef   : > { %v480_v17 = vadd.f32 %v3108_v35, %v479_v15  ;;  %2627 = vmatprep.mubr.msk.f32.mxu1 %vm629_vm1, %v3167_v12  ;;  %v3177_v18 = vmax.f32 %v485_v13, 0.0  ;;  %v559_v48 = vpop.f32.mrf.mxu1 }
  0xf0   : > { %v2583_v19 = vpop.f32.mrf.mxu0  ;;  %2628 = vmatmul.mubr.msk.f32.gmra.mxu1 %vm629_vm1, %v3163_v10  ;;  %v3280_v1 = vmax.f32 %v565_v61, 0.0 }
  0xf1   : > { %v3181_v20 = vmax.f32 %v480_v17, 0.0  ;;  %v495_v21 = vadd.f32 %v2583_v19, %v3108_v35  ;;  %1374 = vrot.lane.b32.xlu0 %v591_v50, %s2930_s26 }
  0xf2   : > { %1759 = vrot.lane.b32.xlu1 %v591_v50, %s2929_s25  ;;  %v489_v23 = vpop.f32.mrf.mxu0  ;;  %v2607_v50 = vpop.f32.mrf.mxu1 }
  0xf3   : > { %v490_v25 = vadd.f32 %v3108_v35, %v489_v23  ;;  %2630 = vmatprep.mubr.msk.f32.mxu1 %vm629_vm1, %v3181_v20  ;;  %v3191_v27 = vmax.f32 %v495_v21, 0.0  ;;  %v575_v3 = vadd.f32 %v2607_v50, %v3108_v35 }
  0xf4   : > { %v2586_v28 = vpop.f32.mrf.mxu0  ;;  %2631 = vmatmul.mubr.msk.f32.gmra.mxu1 %vm629_vm1, %v3177_v18  ;;  %v569_v55 = vpop.f32.mrf.mxu1 }
  0xf5   : > { %v3195_v29 = vmax.f32 %v490_v25, 0.0  ;;  %v505_v30 = vadd.f32 %v2586_v28, %v3108_v35  ;;  %1019 = vrot.lane.b32.xlu0 %v3186_v24, %s2928_s23  ;;  %v570_v62 = vadd.f32 %v3108_v35, %v569_v55  ;;  %v3294_v8 = vmax.f32 %v575_v3, 0.0 }
  0xf6   : > { %987 = vrot.lane.b32.xlu1 %v3122_v52, %s2928_s23  ;;  %v499_v31 = vpop.f32.mrf.mxu0  ;;  %v2610_v58 = vpop.f32.mrf.mxu1 }
  0xf7   : > { %v500_v32 = vadd.f32 %v3108_v35, %v499_v31  ;;  %2633 = vmatprep.mubr.msk.f32.mxu1 %vm629_vm1, %v3195_v29  ;;  %v3205_v37 = vmax.f32 %v505_v30, 0.0  ;;  %v3291_v6 = vmax.f32 %v570_v62, 0.0  ;;  %v585_v9 = vadd.f32 %v2610_v58, %v3108_v35 }
  0xf8   : > { %2634 = vmatmul.mubr.msk.f32.gmra.mxu1 %vm629_vm1, %v3191_v27  ;;  %v579_v63 = vpop.f32.mrf.mxu1 }
  0xf9   : > { %v3209_v38 = vmax.f32 %v500_v32, 0.0  ;;  %1372 = vrot.lane.b32.xlu0 %v3122_v52, %s2930_s26  ;;  %v580_v7 = vadd.f32 %v3108_v35, %v579_v63  ;;  %v3309_v13 = vmax.f32 %v585_v9, 0.0 }
  0xfa   : > { %1757 = vrot.lane.b32.xlu1 %v3122_v52, %s2929_s25  ;;  %v550_v52 = vadd.f32 %v3108_v35, %v549_v43 }
  0xfb   : > { %2636 = vmatprep.mubr.msk.f32.mxu1 %vm629_vm1, %v3209_v38  ;;  %v3305_v11 = vmax.f32 %v580_v7, 0.0 }
  0xfc   : > { %2637 = vmatmul.mubr.msk.f32.gmra.mxu1 %vm629_vm1, %v3205_v37  ;;  %v3263_v56 = vmax.f32 %v550_v52, 0.0 }
  0xfd   : > { %1378 = vrot.lane.b32.xlu0 %v3133_v57, %s2930_s26  ;;  %2639 = vmatprep.mubr.msk.f32.mxu1 %vm629_vm1, %v3143_v0 }
  0xfe   : > { %993 = vrot.lane.b32.xlu1 %v3133_v57, %s2928_s23 }
 0x100   : > { %2640 = vmatmul.mubr.msk.f32.gmra.mxu1 %vm629_vm1, %v3112_v42 }
 0x101   : > { %991 = vrot.lane.b32.xlu0 %v3136_v60, %s2928_s23  ;;  %2642 = vmatprep.mubr.msk.f32.mxu1 %vm629_vm1, %v3186_v24 }
 0x102   : > { %1025 = vrot.lane.b32.xlu1 %v3220_v41, %s2928_s23 }
 0x104   : > { %2643 = vmatmul.mubr.msk.f32.gmra.mxu1 %vm629_vm1, %v3154_v5 }
 0x105   : > { %1023 = vrot.lane.b32.xlu0 %v3238_v47, %s2928_s23  ;;  %2645 = vmatprep.mubr.msk.f32.mxu1 %vm629_vm1, %v3238_v47 }
 0x106   : > { %1763 = vrot.lane.b32.xlu1 %v3133_v57, %s2929_s25  ;;  %v560_v57 = vadd.f32 %v3108_v35, %v559_v48  ;;  %v3516_v48 = vld [vmem:[%s3967_s4] ss:$0 sm:$0xff] }
 0x108   : > { %2646 = vmatmul.mubr.msk.f32.gmra.mxu1 %vm629_vm1, %v3220_v41 }
 0x109   : > { %1376 = vrot.lane.b32.xlu0 %v3136_v60, %s2930_s26  ;;  %2648 = vmatprep.mubr.msk.f32.mxu1 %vm629_vm1, %v3249_v51 }
 0x10a   : > { %1761 = vrot.lane.b32.xlu1 %v3136_v60, %s2929_s25  ;;  %v3277_v60 = vmax.f32 %v560_v57, 0.0 }
 0x10c   : > { %2649 = vmatmul.mubr.msk.f32.gmra.mxu1 %vm629_vm1, %v3252_v53 }
 0x10d   : > { %1382 = vrot.lane.b32.xlu0 %v3148_v2, %s2930_s26  ;;  %2651 = vmatprep.mubr.msk.f32.mxu1 %vm629_vm1, %v3263_v56 }
 0x10e   : > { %997 = vrot.lane.b32.xlu1 %v3148_v2, %s2928_s23 }
 0x110   : > { %2652 = vmatmul.mubr.msk.f32.gmra.mxu1 %vm629_vm1, %v3268_v59 }
 0x111   : > { %995 = vrot.lane.b32.xlu0 %v3152_v4, %s2928_s23  ;;  %2654 = vmatprep.mubr.msk.f32.mxu1 %vm629_vm1, %v3277_v60 }
 0x112   : > { %1029 = vrot.lane.b32.xlu1 %v3252_v53, %s2928_s23 }
 0x114   : > { %2655 = vmatmul.mubr.msk.f32.gmra.mxu1 %vm629_vm1, %v3280_v1 }
 0x115   : > { %1027 = vrot.lane.b32.xlu0 %v3249_v51, %s2928_s23  ;;  %2657 = vmatprep.mubr.msk.f32.mxu1 %vm629_vm1, %v3291_v6 }
 0x116   : > { %1767 = vrot.lane.b32.xlu1 %v3148_v2, %s2929_s25 }
 0x118   : > { %2658 = vmatmul.mubr.msk.f32.gmra.mxu1 %vm629_vm1, %v3294_v8 }
 0x119   : > { %1380 = vrot.lane.b32.xlu0 %v3152_v4, %s2930_s26  ;;  %2660 = vmatprep.mubr.msk.f32.mxu1 %vm629_vm1, %v3305_v11 }
 0x11a   : > { %1765 = vrot.lane.b32.xlu1 %v3152_v4, %s2929_s25 }
 0x11c   : > { %2661 = vmatmul.mubr.msk.f32.gmra.mxu1 %vm629_vm1, %v3309_v13 }
 0x11d   : > { %999 = vrot.lane.b32.xlu0 %v3167_v12, %s2928_s23 }
 0x11e   : > { %1001 = vrot.lane.b32.xlu1 %v3163_v10, %s2928_s23 }
 0x121   : > { %1031 = vrot.lane.b32.xlu0 %v3263_v56, %s2928_s23 }
 0x122   : > { %1033 = vrot.lane.b32.xlu1 %v3268_v59, %s2928_s23 }
 0x125   : > { %1003 = vrot.lane.b32.xlu0 %v3181_v20, %s2928_s23 }
 0x126   : > { %1005 = vrot.lane.b32.xlu1 %v3177_v18, %s2928_s23 }
 0x129   : > { %1035 = vrot.lane.b32.xlu0 %v3277_v60, %s2928_s23 }
 0x12a   : > { %1037 = vrot.lane.b32.xlu1 %v3280_v1, %s2928_s23 }
 0x12d   : > { %1007 = vrot.lane.b32.xlu0 %v3195_v29, %s2928_s23 }
 0x12e   : > { %1009 = vrot.lane.b32.xlu1 %v3191_v27, %s2928_s23 }
 0x131   : > { %1039 = vrot.lane.b32.xlu0 %v3291_v6, %s2928_s23 }
 0x132   : > { %1041 = vrot.lane.b32.xlu1 %v3294_v8, %s2928_s23 }
 0x135   : > { %1011 = vrot.lane.b32.xlu0 %v3209_v38, %s2928_s23 }
 0x136   : > { %1013 = vrot.lane.b32.xlu1 %v3205_v37, %s2928_s23 }
 0x139   : > { %1384 = vrot.lane.b32.xlu0 %v3167_v12, %s2930_s26 }
 0x13a   : > { %1045 = vrot.lane.b32.xlu1 %v3309_v13, %s2928_s23 }
 0x13d   : > { %1386 = vrot.lane.b32.xlu0 %v3163_v10, %s2930_s26 }
 0x13e   : > { %1769 = vrot.lane.b32.xlu1 %v3167_v12, %s2929_s25 }
 0x141   : > { %1388 = vrot.lane.b32.xlu0 %v3181_v20, %s2930_s26 }
 0x142   : > { %1771 = vrot.lane.b32.xlu1 %v3163_v10, %s2929_s25 }
 0x145   : > { %1390 = vrot.lane.b32.xlu0 %v3177_v18, %s2930_s26 }
 0x146   : > { %1773 = vrot.lane.b32.xlu1 %v3181_v20, %s2929_s25 }
 0x149   : > { %1392 = vrot.lane.b32.xlu0 %v3195_v29, %s2930_s26 }
 0x14a   : > { %1775 = vrot.lane.b32.xlu1 %v3177_v18, %s2929_s25 }
 0x14d   : > { %1394 = vrot.lane.b32.xlu0 %v3191_v27, %s2930_s26 }
 0x14e   : > { %1777 = vrot.lane.b32.xlu1 %v3195_v29, %s2929_s25 }
 0x14f   : > { %v986_v2 = vpop.permute.xlu0 %985 }
 0x150   : > { %v3371_v35 = vpop.permute.xlu1 %1017 }
 0x151   : > { %1398 = vrot.lane.b32.xlu0 %v3205_v37, %s2930_s26 }
 0x152   : > { %1779 = vrot.lane.b32.xlu1 %v3191_v27, %s2929_s25 }
 0x153   : > { %v1371_v10 = vpop.permute.xlu0 %1370 }
 0x154   : > { %v3377_v4 = vpop.permute.xlu1 %1755 }
 0x155   : > { %1043 = vrot.lane.b32.xlu0 %v3305_v11, %s2928_s23  ;;  %s2931_s23 = smov [#allocation2]  }
 0x156   : > { %1783 = vrot.lane.b32.xlu1 %v3205_v37, %s2929_s25 }
 0x157   : > { %v984_v14 = vpop.permute.xlu0 %983 }
 0x158   : > { %v3383_v12 = vpop.permute.xlu1 %1753  ;;  %2667 = vmatprep.mubr.msk.f32.mxu0 %vm629_vm1, %v984_v14 }
 0x159   : > { %1400 = vrot.lane.b32.xlu0 %v3143_v0, %s2930_s26  ;;  %2668 = vmatmul.mubr.msk.f32.vlgmr.msra.gmra.mxu0 %vm629_vm1, %v986_v2 }
 0x15a   : > { %1785 = vrot.lane.b32.xlu1 %v3143_v0, %s2929_s25  ;;  %2768 = vmatpush3.msra.mxu0 %v3088_v33 }
 0x15b   : > { %v3391_v16 = vpop.permute.xlu0 %1015  ;;  %2769 = vmatprep.subr.mxu0 %v3096_v34 }
 0x15c   : > { %v990_v15 = vpop.permute.xlu1 %989  ;;  %2770 = vmatpush3.msra.mxu0 %v3096_v34 }
 0x15d   : > { %1402 = vrot.lane.b32.xlu0 %v3112_v42, %s2930_s26 }
 0x15e   : > { %1787 = vrot.lane.b32.xlu1 %v3112_v42, %s2929_s25 }
 0x15f   : > { %v1369_v0 = vpop.permute.xlu0 %1368 }
 0x160   : > { %v3400_v17 = vpop.permute.xlu1 %1021  ;;  %2719 = vmatprep.mubr.msk.f32.mxu1 %vm629_vm1, %v1369_v0 }
 0x161   : > { %1404 = vrot.lane.b32.xlu0 %v3186_v24, %s2930_s26  ;;  %2720 = vmatmul.mubr.msk.f32.vlgmr.msra.gmra.mxu1 %vm629_vm1, %v1371_v10 }
 0x162   : > { %1789 = vrot.lane.b32.xlu1 %v3186_v24, %s2929_s25 }
 0x163   : > { %v1375_v18 = vpop.permute.xlu0 %1374 }
 0x164   : > { %v3408_v33 = vpop.permute.xlu1 %1759 }
 0x165   : > { %1406 = vrot.lane.b32.xlu0 %v3154_v5, %s2930_s26 }
 0x166   : > { %1791 = vrot.lane.b32.xlu1 %v3154_v5, %s2929_s25 }
 0x167   : > { %v3414_v42 = vpop.permute.xlu0 %1019 }
 0x168   : > { %v988_v34 = vpop.permute.xlu1 %987 }
 0x169   : > { %2670 = vmatprep.mubr.msk.f32.mxu0 %vm629_vm1, %v988_v34  ;;  %1408 = vrot.lane.b32.xlu0 %v3238_v47, %s2930_s26 }
 0x16a   : > { %1793 = vrot.lane.b32.xlu1 %v3238_v47, %s2929_s25  ;;  %2671 = vmatmul.mubr.msk.f32.gmra.mxu0 %vm629_vm1, %v990_v15 }
 0x16b   : > { %v1373_v20 = vpop.permute.xlu0 %1372 }
 0x16c   : > { %v3422_v19 = vpop.permute.xlu1 %1757  ;;  %2722 = vmatprep.mubr.msk.f32.mxu1 %vm629_vm1, %v1373_v20 }
 0x16d   : > { %1410 = vrot.lane.b32.xlu0 %v3220_v41, %s2930_s26  ;;  %2723 = vmatmul.mubr.msk.f32.gmra.mxu1 %vm629_vm1, %v1375_v18 }
 0x16e   : > { %1795 = vrot.lane.b32.xlu1 %v3220_v41, %s2929_s25 }
 0x16f   : > { %v1379_v21 = vpop.permute.xlu0 %1378 }
 0x170   : > { %v994_v5 = vpop.permute.xlu1 %993 }
 0x171   : > { %1412 = vrot.lane.b32.xlu0 %v3249_v51, %s2930_s26 }
 0x172   : > { %1797 = vrot.lane.b32.xlu1 %v3249_v51, %s2929_s25 }
 0x173   : > { %v992_v23 = vpop.permute.xlu0 %991 }
 0x174   : > { %v3434_v22 = vpop.permute.xlu1 %1025  ;;  %2673 = vmatprep.mubr.msk.f32.mxu0 %vm629_vm1, %v992_v23 }
 0x175   : > { %1396 = vrot.lane.b32.xlu0 %v3209_v38, %s2930_s26  ;;  %2674 = vmatmul.mubr.msk.f32.gmra.mxu0 %vm629_vm1, %v994_v5 }
 0x176   : > { %1781 = vrot.lane.b32.xlu1 %v3209_v38, %s2929_s25 }
 0x177   : > { %v3444_v25 = vpop.permute.xlu0 %1023 }
 0x178   : > { %v3442_v24 = vpop.permute.xlu1 %1763 }
 0x179   : > { %1414 = vrot.lane.b32.xlu0 %v3252_v53, %s2930_s26 }
 0x17a   : > { %1799 = vrot.lane.b32.xlu1 %v3252_v53, %s2929_s25 }
 0x17b   : > { %v1377_v27 = vpop.permute.xlu0 %1376 }
 0x17c   : > { %v3450_v26 = vpop.permute.xlu1 %1761  ;;  %2725 = vmatprep.mubr.msk.f32.mxu1 %vm629_vm1, %v1377_v27 }
 0x17d   : > { %1416 = vrot.lane.b32.xlu0 %v3263_v56, %s2930_s26  ;;  %2726 = vmatmul.mubr.msk.f32.gmra.mxu1 %vm629_vm1, %v1379_v21 }
 0x17e   : > { %1801 = vrot.lane.b32.xlu1 %v3263_v56, %s2929_s25 }
 0x17f   : > { %v1383_v29 = vpop.permute.xlu0 %1382 }
 0x180   : > { %v998_v28 = vpop.permute.xlu1 %997 }
 0x181   : > { %1418 = vrot.lane.b32.xlu0 %v3268_v59, %s2930_s26 }
 0x182   : > { %1803 = vrot.lane.b32.xlu1 %v3268_v59, %s2929_s25 }
 0x183   : > { %v996_v31 = vpop.permute.xlu0 %995 }
 0x184   : > { %v3462_v30 = vpop.permute.xlu1 %1029  ;;  %2676 = vmatprep.mubr.msk.f32.mxu0 %vm629_vm1, %v996_v31 }
 0x185   : > { %1420 = vrot.lane.b32.xlu0 %v3277_v60, %s2930_s26  ;;  %2677 = vmatmul.mubr.msk.f32.gmra.mxu0 %vm629_vm1, %v998_v28 }
 0x186   : > { %1805 = vrot.lane.b32.xlu1 %v3277_v60, %s2929_s25 }
 0x187   : > { %v3472_v36 = vpop.permute.xlu0 %1027 }
 0x188   : > { %v3470_v32 = vpop.permute.xlu1 %1767 }
 0x189   : > { %1422 = vrot.lane.b32.xlu0 %v3280_v1, %s2930_s26 }
 0x18a   : > { %1807 = vrot.lane.b32.xlu1 %v3280_v1, %s2929_s25 }
 0x18b   : > { %v1381_v38 = vpop.permute.xlu0 %1380 }
 0x18c   : > { %v3478_v37 = vpop.permute.xlu1 %1765  ;;  %2728 = vmatprep.mubr.msk.f32.mxu1 %vm629_vm1, %v1381_v38 }
 0x18d   : > { %1424 = vrot.lane.b32.xlu0 %v3291_v6, %s2930_s26  ;;  %2729 = vmatmul.mubr.msk.f32.gmra.mxu1 %vm629_vm1, %v1383_v29 }
 0x18e   : > { %1809 = vrot.lane.b32.xlu1 %v3291_v6, %s2929_s25 }
 0x18f   : > { %v1000_v40 = vpop.permute.xlu0 %999 }
 0x190   : > { %v1002_v39 = vpop.permute.xlu1 %1001  ;;  %2679 = vmatprep.mubr.msk.f32.mxu0 %vm629_vm1, %v1000_v40 }
 0x191   : > { %1426 = vrot.lane.b32.xlu0 %v3294_v8, %s2930_s26  ;;  %2680 = vmatmul.mubr.msk.f32.gmra.mxu0 %vm629_vm1, %v1002_v39 }
 0x192   : > { %1811 = vrot.lane.b32.xlu1 %v3294_v8, %s2929_s25 }
 0x193   : > { %v3494_v43 = vpop.permute.xlu0 %1031 }
 0x194   : > { %v3492_v41 = vpop.permute.xlu1 %1033 }
 0x195   : > { %1428 = vrot.lane.b32.xlu0 %v3305_v11, %s2930_s26 }
 0x196   : > { %1813 = vrot.lane.b32.xlu1 %v3305_v11, %s2929_s25 }
 0x197   : > { %v1004_v45 = vpop.permute.xlu0 %1003 }
 0x198   : > { %v1006_v44 = vpop.permute.xlu1 %1005  ;;  %2682 = vmatprep.mubr.msk.f32.mxu0 %vm629_vm1, %v1004_v45 }
 0x199   : > { %1430 = vrot.lane.b32.xlu0 %v3309_v13, %s2930_s26  ;;  %2683 = vmatmul.mubr.msk.f32.gmra.mxu0 %vm629_vm1, %v1006_v44 }
 0x19a   : > { %1815 = vrot.lane.b32.xlu1 %v3309_v13, %s2929_s25  ;;  %s2870_s25 = sshll.u32 %s2931_s23, 4  ;;  %s2871_s25 = int_to_ptr.vmem [resolvable:$false] %s2870_s25 }
 0x19b   : > { %v3509_v47 = vpop.permute.xlu0 %1035  ;;  %s2872_s26 = scalar_lea.vmem %s2871_s25, 32768  ;;  %p2873_p0 = scmp.lt.s32.totalorder %s3912_s11, %s2871_s25 }
 0x19c   : > { %v3507_v46 = vpop.permute.xlu1 %1037  ;;  %p2874_p1 = scmp.lt.s32.totalorder %s2872_s26, %s2866_s17 }
 0x19e   : > { %p2875_p2 = por %p2874_p1, %p2873_p0 }
 0x19f   : > { %v1008_v50 = vpop.permute.xlu0 %1007 }
 0x1a0   : > { %v1010_v49 = vpop.permute.xlu1 %1009  ;;  %v2617_v51 = vpop.f32.mrf.mxu1  ;;  %2685 = vmatprep.mubr.msk.f32.mxu0 %vm629_vm1, %v1008_v50  ;;  %p2876_p3 = pnand %p2875_p2, %p2869_p13 }
 0x1a1   : > { %v798_v52 = vadd.f32 %v2617_v51, %v3516_v48  ;;  %2686 = vmatmul.mubr.msk.f32.gmra.mxu0 %vm629_vm1, %v1010_v49 }
 0x1a2   : > { %v792_v53 = vpop.f32.mrf.mxu1 }
 0x1a3   : > { %952 = vst [vmem:[%s3521_s9 + $0x20] sm:$0xff] %v798_v52  ;;  %v793_v54 = vadd.f32 %v3516_v48, %v792_v53  ;;  %v3527_v56 = vpop.permute.xlu0 %1039 }
 0x1a4   : > { %v3525_v55 = vpop.permute.xlu1 %1041  ;;  %v2620_v57 = vpop.f32.mrf.mxu1 }
 0x1a5   : > { %951 = vst [vmem:[%s3521_s9] sm:$0xff] %v793_v54  ;;  %v808_v58 = vadd.f32 %v2620_v57, %v3516_v48 }
 0x1a6   : > { %v802_v59 = vpop.f32.mrf.mxu1 }
 0x1a7   : > { %954 = vst [vmem:[%s3521_s9 + $0x60] sm:$0xff] %v808_v58  ;;  %v803_v61 = vadd.f32 %v3516_v48, %v802_v59  ;;  %v1012_v62 = vpop.permute.xlu0 %1011 }
 0x1a8   : > { %v1014_v60 = vpop.permute.xlu1 %1013  ;;  %v2623_v63 = vpop.f32.mrf.mxu1  ;;  %2688 = vmatprep.mubr.msk.f32.mxu0 %vm629_vm1, %v1012_v62 }
 0x1a9   : > { %953 = vst [vmem:[%s3521_s9 + $0x40] sm:$0xff] %v803_v61  ;;  %v818_v1 = vadd.f32 %v2623_v63, %v3516_v48  ;;  %2689 = vmatmul.mubr.msk.f32.gmra.mxu0 %vm629_vm1, %v1014_v60 }
 0x1aa   : > { %v812_v3 = vpop.f32.mrf.mxu1  ;;  %2691 = vmatprep.mubr.msk.f32.mxu0 %vm629_vm1, %v3391_v16 }
 0x1ab   : > { %956 = vst [vmem:[%s3521_s9 + $0xa0] sm:$0xff] %v818_v1  ;;  %v813_v6 = vadd.f32 %v3516_v48, %v812_v3  ;;  %v1385_v8 = vpop.permute.xlu0 %1384 }
 0x1ac   : > { %v3541_v7 = vpop.permute.xlu1 %1045  ;;  %v2626_v9 = vpop.f32.mrf.mxu1  ;;  %2731 = vmatprep.mubr.msk.f32.mxu1 %vm629_vm1, %v1385_v8 }
 0x1ad   : > { %955 = vst [vmem:[%s3521_s9 + $0x80] sm:$0xff] %v813_v6  ;;  %v828_v11 = vadd.f32 %v2626_v9, %v3516_v48  ;;  %2692 = vmatmul.mubr.msk.f32.gmra.mxu0 %vm629_vm1, %v3371_v35 }
 0x1ae   : > { %v822_v13 = vpop.f32.mrf.mxu1  ;;  %2694 = vmatprep.mubr.msk.f32.mxu0 %vm629_vm1, %v3414_v42 }
 0x1af   : > { %958 = vst [vmem:[%s3521_s9 + $0xe0] sm:$0xff] %v828_v11  ;;  %v823_v2 = vadd.f32 %v3516_v48, %v822_v13  ;;  %v1387_v14 = vpop.permute.xlu0 %1386 }
 0x1b0   : > { %v3552_v10 = vpop.permute.xlu1 %1769  ;;  %v2629_v15 = vpop.f32.mrf.mxu1  ;;  %2732 = vmatmul.mubr.msk.f32.gmra.mxu1 %vm629_vm1, %v1387_v14 }
 0x1b1   : > { %957 = vst [vmem:[%s3521_s9 + $0xc0] sm:$0xff] %v823_v2  ;;  %v838_v16 = vadd.f32 %v2629_v15, %v3516_v48  ;;  %2695 = vmatmul.mubr.msk.f32.gmra.mxu0 %vm629_vm1, %v3400_v17 }
 0x1b2   : > { %v832_v35 = vpop.f32.mrf.mxu1  ;;  %2697 = vmatprep.mubr.msk.f32.mxu0 %vm629_vm1, %v3444_v25 }
 0x1b3   : > { %960 = vst [vmem:[%s3521_s9 + $0x120] sm:$0xff] %v838_v16  ;;  %v833_v0 = vadd.f32 %v3516_v48, %v832_v35  ;;  %v1389_v34 = vpop.permute.xlu0 %1388 }
 0x1b4   : > { %v3563_v18 = vpop.permute.xlu1 %1771  ;;  %v2632_v42 = vpop.f32.mrf.mxu1  ;;  %2734 = vmatprep.mubr.msk.f32.mxu1 %vm629_vm1, %v1389_v34 }
 0x1b5   : > { %959 = vst [vmem:[%s3521_s9 + $0x100] sm:$0xff] %v833_v0  ;;  %v848_v20 = vadd.f32 %v2632_v42, %v3516_v48  ;;  %2698 = vmatmul.mubr.msk.f32.gmra.mxu0 %vm629_vm1, %v3434_v22 }
 0x1b6   : > { %v842_v17 = vpop.f32.mrf.mxu1  ;;  %2700 = vmatprep.mubr.msk.f32.mxu0 %vm629_vm1, %v3472_v36 }
 0x1b7   : > { %962 = vst [vmem:[%s3521_s9 + $0x160] sm:$0xff] %v848_v20  ;;  %v843_v5 = vadd.f32 %v3516_v48, %v842_v17  ;;  %v1391_v23 = vpop.permute.xlu0 %1390 }
 0x1b8   : > { %v3574_v21 = vpop.permute.xlu1 %1773  ;;  %v2635_v25 = vpop.f32.mrf.mxu1  ;;  %2735 = vmatmul.mubr.msk.f32.gmra.mxu1 %vm629_vm1, %v1391_v23 }
 0x1b9   : > { %961 = vst [vmem:[%s3521_s9 + $0x140] sm:$0xff] %v843_v5  ;;  %v858_v27 = vadd.f32 %v2635_v25, %v3516_v48  ;;  %2701 = vmatmul.mubr.msk.f32.gmra.mxu0 %vm629_vm1, %v3462_v30 }
 0x1ba   : > { %v852_v22 = vpop.f32.mrf.mxu1  ;;  %2703 = vmatprep.mubr.msk.f32.mxu0 %vm629_vm1, %v3494_v43 }
 0x1bb   : > { %964 = vst [vmem:[%s3521_s9 + $0x1a0] sm:$0xff] %v858_v27  ;;  %v853_v28 = vadd.f32 %v3516_v48, %v852_v22  ;;  %v1393_v31 = vpop.permute.xlu0 %1392 }
 0x1bc   : > { %v3585_v29 = vpop.permute.xlu1 %1775  ;;  %v2638_v36 = vpop.f32.mrf.mxu1  ;;  %2737 = vmatprep.mubr.msk.f32.mxu1 %vm629_vm1, %v1393_v31 }
 0x1bd   : > { %963 = vst [vmem:[%s3521_s9 + $0x180] sm:$0xff] %v853_v28  ;;  %v868_v38 = vadd.f32 %v2638_v36, %v3516_v48  ;;  %2704 = vmatmul.mubr.msk.f32.gmra.mxu0 %vm629_vm1, %v3492_v41 }
 0x1be   : > { %v862_v30 = vpop.f32.mrf.mxu1  ;;  %2706 = vmatprep.mubr.msk.f32.mxu0 %vm629_vm1, %v3509_v47 }
 0x1bf   : > { %966 = vst [vmem:[%s3521_s9 + $0x1e0] sm:$0xff] %v868_v38  ;;  %v863_v39 = vadd.f32 %v3516_v48, %v862_v30  ;;  %v1395_v43 = vpop.permute.xlu0 %1394 }
 0x1c0   : > { %v3596_v40 = vpop.permute.xlu1 %1777  ;;  %v2641_v44 = vpop.f32.mrf.mxu1  ;;  %2738 = vmatmul.mubr.msk.f32.gmra.mxu1 %vm629_vm1, %v1395_v43 }
 0x1c1   : > { %965 = vst [vmem:[%s3521_s9 + $0x1c0] sm:$0xff] %v863_v39  ;;  %v878_v45 = vadd.f32 %v2641_v44, %v3516_v48  ;;  %2707 = vmatmul.mubr.msk.f32.gmra.mxu0 %vm629_vm1, %v3507_v46 }
 0x1c2   : > { %v872_v41 = vpop.f32.mrf.mxu1  ;;  %2709 = vmatprep.mubr.msk.f32.mxu0 %vm629_vm1, %v3527_v56 }
 0x1c3   : > { %968 = vst [vmem:[%s3521_s9 + $0x220] sm:$0xff] %v878_v45  ;;  %v873_v47 = vadd.f32 %v3516_v48, %v872_v41  ;;  %v3609_v50 = vpop.permute.xlu0 %1398 }
 0x1c4   : > { %v3607_v49 = vpop.permute.xlu1 %1779  ;;  %v2644_v51 = vpop.f32.mrf.mxu1 }
 0x1c5   : > { %967 = vst [vmem:[%s3521_s9 + $0x200] sm:$0xff] %v873_v47  ;;  %v888_v52 = vadd.f32 %v2644_v51, %v3516_v48  ;;  %2710 = vmatmul.mubr.msk.f32.gmra.mxu0 %vm629_vm1, %v3525_v55 }
 0x1c6   : > { %v882_v46 = vpop.f32.mrf.mxu1 }
 0x1c7   : > { %970 = vst [vmem:[%s3521_s9 + $0x260] sm:$0xff] %v888_v52  ;;  %v883_v53 = vadd.f32 %v3516_v48, %v882_v46  ;;  %v1044_v56 = vpop.permute.xlu0 %1043 }
 0x1c8   : > { %v3617_v54 = vpop.permute.xlu1 %1783  ;;  %v2647_v57 = vpop.f32.mrf.mxu1  ;;  %2712 = vmatprep.mubr.msk.f32.mxu0 %vm629_vm1, %v1044_v56 }
 0x1c9   : > { %969 = vst [vmem:[%s3521_s9 + $0x240] sm:$0xff] %v883_v53  ;;  %v898_v58 = vadd.f32 %v2647_v57, %v3516_v48  ;;  %2713 = vmatmul.mubr.msk.f32.gmra.mxu0 %vm629_vm1, %v3541_v7 }
 0x1ca   : > { %v892_v59 = vpop.f32.mrf.mxu1  ;;  %2771 = vmatprep.mubr.msk.f32.mxu0 %vm629_vm1, %v3383_v12 }
 0x1cb   : > { %972 = vst [vmem:[%s3521_s9 + $0x2a0] sm:$0xff] %v898_v58  ;;  %v893_v55 = vadd.f32 %v3516_v48, %v892_v59  ;;  %v3630_v60 = vpop.permute.xlu0 %1400 }
 0x1cc   : > { %v3628_v61 = vpop.permute.xlu1 %1785  ;;  %v2650_v62 = vpop.f32.mrf.mxu1 }
 0x1cd   : > { %971 = vst [vmem:[%s3521_s9 + $0x280] sm:$0xff] %v893_v55  ;;  %2772 = vmatmul.mubr.msk.f32.vlgmr.msra.gmra.mxu0 %vm629_vm1, %v3377_v4  ;;  %v908_v63 = vadd.f32 %v2650_v62, %v3516_v48 }
 0x1ce   : > { %2774 = vmatprep.mubr.msk.f32.mxu0 %vm629_vm1, %v3422_v19  ;;  %v902_v12 = vpop.f32.mrf.mxu1 }
 0x1cf   : > { %v1403_v3 = vpop.permute.xlu0 %1402  ;;  %974 = vst [vmem:[%s3521_s9 + $0x2e0] sm:$0xff] %v908_v63  ;;  %v903_v6 = vadd.f32 %v3516_v48, %v902_v12 }
 0x1d0   : > { %v1788_v1 = vpop.permute.xlu1 %1787  ;;  %v2653_v7 = vpop.f32.mrf.mxu1 }
 0x1d1   : > { %973 = vst [vmem:[%s3521_s9 + $0x2c0] sm:$0xff] %v903_v6  ;;  %2775 = vmatmul.mubr.msk.f32.gmra.mxu0 %vm629_vm1, %v3408_v33  ;;  %v918_v4 = vadd.f32 %v2653_v7, %v3516_v48 }
 0x1d2   : > { %2777 = vmatprep.mubr.msk.f32.mxu0 %vm629_vm1, %v3450_v26  ;;  %v912_v8 = vpop.f32.mrf.mxu1 }
 0x1d3   : > { %v1405_v9 = vpop.permute.xlu0 %1404  ;;  %976 = vst [vmem:[%s3521_s9 + $0x320] sm:$0xff] %v918_v4  ;;  %v913_v11 = vadd.f32 %v3516_v48, %v912_v8 }
 0x1d4   : > { %v1790_v19 = vpop.permute.xlu1 %1789  ;;  %v2656_v13 = vpop.f32.mrf.mxu1 }
 0x1d5   : > { %2778 = vmatmul.mubr.msk.f32.gmra.mxu0 %vm629_vm1, %v3442_v24  ;;  %975 = vst [vmem:[%s3521_s9 + $0x300] sm:$0xff] %v913_v11  ;;  %v928_v33 = vadd.f32 %v2656_v13, %v3516_v48 }
 0x1d6   : > { %2780 = vmatprep.mubr.msk.f32.mxu0 %vm629_vm1, %v3478_v37  ;;  %v922_v2 = vpop.f32.mrf.mxu1 }
 0x1d7   : > { %v1407_v14 = vpop.permute.xlu0 %1406  ;;  %978 = vst [vmem:[%s3521_s9 + $0x360] sm:$0xff] %v928_v33  ;;  %v923_v15 = vadd.f32 %v3516_v48, %v922_v2 }
 0x1d8   : > { %v1792_v26 = vpop.permute.xlu1 %1791  ;;  %v2659_v16 = vpop.f32.mrf.mxu1 }
 0x1d9   : > { %2781 = vmatmul.mubr.msk.f32.gmra.mxu0 %vm629_vm1, %v3470_v32  ;;  %977 = vst [vmem:[%s3521_s9 + $0x340] sm:$0xff] %v923_v15  ;;  %v938_v24 = vadd.f32 %v2659_v16, %v3516_v48 }
 0x1da   : > { %2783 = vmatprep.mubr.msk.f32.mxu0 %vm629_vm1, %v3552_v10  ;;  %v932_v35 = vpop.f32.mrf.mxu1 }
 0x1db   : > { %v1409_v0 = vpop.permute.xlu0 %1408  ;;  %980 = vst [vmem:[%s3521_s9 + $0x3a0] sm:$0xff] %v938_v24  ;;  %v933_v34 = vadd.f32 %v3516_v48, %v932_v35 }
 0x1dc   : > { %v1794_v37 = vpop.permute.xlu1 %1793  ;;  %v2662_v42 = vpop.f32.mrf.mxu1 }
 0x1dd   : > { %2784 = vmatmul.mubr.msk.f32.gmra.mxu0 %vm629_vm1, %v3563_v18  ;;  %979 = vst [vmem:[%s3521_s9 + $0x380] sm:$0xff] %v933_v34  ;;  %v948_v32 = vadd.f32 %v2662_v42, %v3516_v48 }
 0x1de   : > { %2786 = vmatprep.mubr.msk.f32.mxu0 %vm629_vm1, %v3574_v21  ;;  %v942_v20 = vpop.f32.mrf.mxu1 }
 0x1df   : > { %v1411_v10 = vpop.permute.xlu0 %1410  ;;  %982 = vst [vmem:[%s3521_s9 + $0x3e0] sm:$0xff] %v948_v32  ;;  %v943_v5 = vadd.f32 %v3516_v48, %v942_v20 }
 0x1e0   : > { %v1796_v17 = vpop.permute.xlu1 %1795 }
 0x1e1   : > { %2787 = vmatmul.mubr.msk.f32.gmra.mxu0 %vm629_vm1, %v3585_v29  ;;  %981 = vst [vmem:[%s3521_s9 + $0x3c0] sm:$0xff] %v943_v5 }
 0x1e2   : > { %2789 = vmatprep.mubr.msk.f32.mxu0 %vm629_vm1, %v3596_v40 }
 0x1e3   : > { %v1413_v23 = vpop.permute.xlu0 %1412 }
 0x1e4   : > { %v1798_v18 = vpop.permute.xlu1 %1797 }
 0x1e5   : > { %2790 = vmatmul.mubr.msk.f32.gmra.mxu0 %vm629_vm1, %v3607_v49 }
 0x1e7   : > { %v1397_v21 = vpop.permute.xlu0 %1396 }
 0x1e8   : > { %v1782_v25 = vpop.permute.xlu1 %1781  ;;  %2740 = vmatprep.mubr.msk.f32.mxu1 %vm629_vm1, %v1397_v21 }
 0x1e9   : > { %2792 = vmatprep.mubr.msk.f32.mxu0 %vm629_vm1, %v1782_v25  ;;  %2741 = vmatmul.mubr.msk.f32.gmra.mxu1 %vm629_vm1, %v3609_v50 }
 0x1ea   : > { %2793 = vmatmul.mubr.msk.f32.gmra.mxu0 %vm629_vm1, %v3617_v54  ;;  %2743 = vmatprep.mubr.msk.f32.mxu1 %vm629_vm1, %v3630_v60 }
 0x1eb   : > { %2795 = vmatprep.mubr.msk.f32.mxu0 %vm629_vm1, %v3628_v61  ;;  %v1415_v22 = vpop.permute.xlu0 %1414 }
 0x1ec   : > { %v1800_v27 = vpop.permute.xlu1 %1799 }
 0x1ed   : > { %2744 = vmatmul.mubr.msk.f32.gmra.mxu1 %vm629_vm1, %v1403_v3 }
 0x1ee   : > { %2796 = vmatmul.mubr.msk.f32.gmra.mxu0 %vm629_vm1, %v1788_v1  ;;  %2746 = vmatprep.mubr.msk.f32.mxu1 %vm629_vm1, %v1405_v9 }
 0x1ef   : > { %2798 = vmatprep.mubr.msk.f32.mxu0 %vm629_vm1, %v1790_v19  ;;  %v1417_v29 = vpop.permute.xlu0 %1416 }
 0x1f0   : > { %v1802_v28 = vpop.permute.xlu1 %1801 }
 0x1f1   : > { %2747 = vmatmul.mubr.msk.f32.gmra.mxu1 %vm629_vm1, %v1407_v14 }
 0x1f2   : > { %2799 = vmatmul.mubr.msk.f32.gmra.mxu0 %vm629_vm1, %v1792_v26  ;;  %2749 = vmatprep.mubr.msk.f32.mxu1 %vm629_vm1, %v1409_v0 }
 0x1f3   : > { %2801 = vmatprep.mubr.msk.f32.mxu0 %vm629_vm1, %v1794_v37  ;;  %v1419_v36 = vpop.permute.xlu0 %1418 }
 0x1f4   : > { %v1804_v31 = vpop.permute.xlu1 %1803 }
 0x1f5   : > { %2750 = vmatmul.mubr.msk.f32.gmra.mxu1 %vm629_vm1, %v1411_v10 }
 0x1f6   : > { %2802 = vmatmul.mubr.msk.f32.gmra.mxu0 %vm629_vm1, %v1796_v17  ;;  %2752 = vmatprep.mubr.msk.f32.mxu1 %vm629_vm1, %v1413_v23 }
 0x1f7   : > { %2804 = vmatprep.mubr.msk.f32.mxu0 %vm629_vm1, %v1798_v18  ;;  %v1421_v30 = vpop.permute.xlu0 %1420 }
 0x1f8   : > { %v1806_v38 = vpop.permute.xlu1 %1805 }
 0x1f9   : > { %2753 = vmatmul.mubr.msk.f32.gmra.mxu1 %vm629_vm1, %v1415_v22 }
 0x1fa   : > { %2805 = vmatmul.mubr.msk.f32.gmra.mxu0 %vm629_vm1, %v1800_v27  ;;  %2755 = vmatprep.mubr.msk.f32.mxu1 %vm629_vm1, %v1417_v29 }
 0x1fb   : > { %2807 = vmatprep.mubr.msk.f32.mxu0 %vm629_vm1, %v1802_v28  ;;  %v1423_v40 = vpop.permute.xlu0 %1422 }
 0x1fc   : > { %v1808_v39 = vpop.permute.xlu1 %1807 }
 0x1fd   : > { %2756 = vmatmul.mubr.msk.f32.gmra.mxu1 %vm629_vm1, %v1419_v36 }
 0x1fe   : > { %2808 = vmatmul.mubr.msk.f32.gmra.mxu0 %vm629_vm1, %v1804_v31  ;;  %2758 = vmatprep.mubr.msk.f32.mxu1 %vm629_vm1, %v1421_v30 }
 0x1ff   : > { %2810 = vmatprep.mubr.msk.f32.mxu0 %vm629_vm1, %v1806_v38  ;;  %v1425_v44 = vpop.permute.xlu0 %1424 }
 0x200   : > { %v1810_v43 = vpop.permute.xlu1 %1809 }
 0x201   : > { %2759 = vmatmul.mubr.msk.f32.gmra.mxu1 %vm629_vm1, %v1423_v40 }
 0x202   : > { %2811 = vmatmul.mubr.msk.f32.gmra.mxu0 %vm629_vm1, %v1808_v39  ;;  %2761 = vmatprep.mubr.msk.f32.mxu1 %vm629_vm1, %v1425_v44 }
 0x203   : > { %2813 = vmatprep.mubr.msk.f32.mxu0 %vm629_vm1, %v1810_v43  ;;  %v1427_v41 = vpop.permute.xlu0 %1426 }
 0x204   : > { %v1812_v45 = vpop.permute.xlu1 %1811 }
 0x205   : > { %2762 = vmatmul.mubr.msk.f32.gmra.mxu1 %vm629_vm1, %v1427_v41 }
 0x206   : > { %2814 = vmatmul.mubr.msk.f32.gmra.mxu0 %vm629_vm1, %v1812_v45 }
 0x207   : > { %v1429_v49 = vpop.permute.xlu0 %1428 }
 0x208   : > { %v1814_v47 = vpop.permute.xlu1 %1813  ;;  %2764 = vmatprep.mubr.msk.f32.mxu1 %vm629_vm1, %v1429_v49 }
 0x209   : > { %2816 = vmatprep.mubr.msk.f32.mxu0 %vm629_vm1, %v1814_v47 }
 0x20b   : > { %v1431_v51 = vpop.permute.xlu0 %1430 }
 0x20c   : > { %v1816_v50 = vpop.permute.xlu1 %1815  ;;  %2765 = vmatmul.mubr.msk.f32.gmra.mxu1 %vm629_vm1, %v1431_v51 }
 0x20d   : > { %2817 = vmatmul.mubr.msk.f32.gmra.mxu0 %vm629_vm1, %v1816_v50 }
 0x219   : > { %v2669_v52 = vpop.f32.mrf.mxu0 }
 0x21a   : > { %v1183_v46 = vadd.f32 %v2669_v52, %v3516_v48 }
 0x21b   : > { %v1177_v53 = vpop.f32.mrf.mxu0 }
 0x21c   : > { %1337 = vst [vmem:[%s3521_s9 + $0x28] sm:$0xff] %v1183_v46  ;;  %v1178_v54 = vadd.f32 %v3516_v48, %v1177_v53 }
 0x21e   : > { %1336 = vst [vmem:[%s3521_s9 + $0x8] sm:$0xff] %v1178_v54 }
 0x221   : > { %v2721_v56 = vpop.f32.mrf.mxu1 }
 0x222   : > { %v1568_v57 = vadd.f32 %v2721_v56, %v3516_v48 }
 0x223   : > { %v1562_v58 = vpop.f32.mrf.mxu1 }
 0x224   : > { %1722 = vst [vmem:[%s3521_s9 + $0x30] sm:$0xff] %v1568_v57  ;;  %v1563_v59 = vadd.f32 %v3516_v48, %v1562_v58 }
 0x226   : > { %1721 = vst [vmem:[%s3521_s9 + $0x10] sm:$0xff] %v1563_v59 }
 0x22a   : > { %v2672_v55 = vpop.f32.mrf.mxu0 }
 0x22b   : > { %v1193_v61 = vadd.f32 %v2672_v55, %v3516_v48 }
 0x22c   : > { %v1187_v60 = vpop.f32.mrf.mxu0 }
 0x22d   : > { %1339 = vst [vmem:[%s3521_s9 + $0x68] sm:$0xff] %v1193_v61  ;;  %v1188_v62 = vadd.f32 %v3516_v48, %v1187_v60  ;;  %v2724_v63 = vpop.f32.mrf.mxu1 }
 0x22e   : > { %v1578_v12 = vadd.f32 %v2724_v63, %v3516_v48 }
 0x22f   : > { %1338 = vst [vmem:[%s3521_s9 + $0x48] sm:$0xff] %v1188_v62  ;;  %v1572_v1 = vpop.f32.mrf.mxu1 }
 0x230   : > { %1724 = vst [vmem:[%s3521_s9 + $0x70] sm:$0xff] %v1578_v12  ;;  %v1573_v3 = vadd.f32 %v3516_v48, %v1572_v1 }
 0x232   : > { %1723 = vst [vmem:[%s3521_s9 + $0x50] sm:$0xff] %v1573_v3 }
 0x235   : > { %v2675_v6 = vpop.f32.mrf.mxu0 }
 0x236   : > { %v1203_v7 = vadd.f32 %v2675_v6, %v3516_v48 }
 0x237   : > { %v1197_v4 = vpop.f32.mrf.mxu0 }
 0x238   : > { %1341 = vst [vmem:[%s3521_s9 + $0xa8] sm:$0xff] %v1203_v7  ;;  %v1198_v8 = vadd.f32 %v3516_v48, %v1197_v4 }
 0x23a   : > { %1340 = vst [vmem:[%s3521_s9 + $0x88] sm:$0xff] %v1198_v8 }
 0x23d   : > { %v2727_v19 = vpop.f32.mrf.mxu1 }
 0x23e   : > { %v1588_v9 = vadd.f32 %v2727_v19, %v3516_v48 }
 0x23f   : > { %v1582_v11 = vpop.f32.mrf.mxu1 }
 0x240   : > { %1726 = vst [vmem:[%s3521_s9 + $0xb0] sm:$0xff] %v1588_v9  ;;  %v1583_v13 = vadd.f32 %v3516_v48, %v1582_v11 }
 0x242   : > { %1725 = vst [vmem:[%s3521_s9 + $0x90] sm:$0xff] %v1583_v13 }
 0x245   : > { %v2678_v33 = vpop.f32.mrf.mxu0 }
 0x246   : > { %v1213_v2 = vadd.f32 %v2678_v33, %v3516_v48 }
 0x247   : > { %v1207_v26 = vpop.f32.mrf.mxu0 }
 0x248   : > { %1343 = vst [vmem:[%s3521_s9 + $0xe8] sm:$0xff] %v1213_v2  ;;  %v1208_v14 = vadd.f32 %v3516_v48, %v1207_v26 }
 0x24a   : > { %1342 = vst [vmem:[%s3521_s9 + $0xc8] sm:$0xff] %v1208_v14 }
 0x24d   : > { %v2730_v15 = vpop.f32.mrf.mxu1 }
 0x24e   : > { %v1598_v16 = vadd.f32 %v2730_v15, %v3516_v48 }
 0x24f   : > { %v1592_v24 = vpop.f32.mrf.mxu1 }
 0x250   : > { %1728 = vst [vmem:[%s3521_s9 + $0xf0] sm:$0xff] %v1598_v16  ;;  %v1593_v35 = vadd.f32 %v3516_v48, %v1592_v24 }
 0x251   : > { %v2681_v37 = vpop.f32.mrf.mxu0 }
 0x252   : > { %1727 = vst [vmem:[%s3521_s9 + $0xd0] sm:$0xff] %v1593_v35  ;;  %v1223_v0 = vadd.f32 %v2681_v37, %v3516_v48 }
 0x253   : > { %v1217_v34 = vpop.f32.mrf.mxu0 }
 0x254   : > { %1345 = vst [vmem:[%s3521_s9 + $0x128] sm:$0xff] %v1223_v0  ;;  %v1218_v42 = vadd.f32 %v3516_v48, %v1217_v34 }
 0x256   : > { %1344 = vst [vmem:[%s3521_s9 + $0x108] sm:$0xff] %v1218_v42 }
 0x259   : > { %v2684_v32 = vpop.f32.mrf.mxu0 }
 0x25a   : > { %v1233_v20 = vadd.f32 %v2684_v32, %v3516_v48 }
 0x25b   : > { %v1227_v17 = vpop.f32.mrf.mxu0 }
 0x25c   : > { %1347 = vst [vmem:[%s3521_s9 + $0x168] sm:$0xff] %v1233_v20  ;;  %v1228_v10 = vadd.f32 %v3516_v48, %v1227_v17 }
 0x25e   : > { %1346 = vst [vmem:[%s3521_s9 + $0x148] sm:$0xff] %v1228_v10 }
 0x261   : > { %v2687_v5 = vpop.f32.mrf.mxu0 }
 0x262   : > { %v1243_v18 = vadd.f32 %v2687_v5, %v3516_v48 }
 0x263   : > { %v1237_v23 = vpop.f32.mrf.mxu0 }
 0x264   : > { %1349 = vst [vmem:[%s3521_s9 + $0x1a8] sm:$0xff] %v1243_v18  ;;  %v1238_v25 = vadd.f32 %v3516_v48, %v1237_v23 }
 0x266   : > { %1348 = vst [vmem:[%s3521_s9 + $0x188] sm:$0xff] %v1238_v25 }
 0x269   : > { %v2690_v21 = vpop.f32.mrf.mxu0 }
 0x26a   : > { %v1253_v27 = vadd.f32 %v2690_v21, %v3516_v48 }
 0x26b   : > { %v1247_v22 = vpop.f32.mrf.mxu0 }
 0x26c   : > { %1351 = vst [vmem:[%s3521_s9 + $0x1e8] sm:$0xff] %v1253_v27  ;;  %v1248_v28 = vadd.f32 %v3516_v48, %v1247_v22 }
 0x26d   : > { %v2693_v29 = vpop.f32.mrf.mxu0 }
 0x26e   : > { %1350 = vst [vmem:[%s3521_s9 + $0x1c8] sm:$0xff] %v1248_v28  ;;  %v1263_v31 = vadd.f32 %v2693_v29, %v3516_v48 }
 0x26f   : > { %v1257_v36 = vpop.f32.mrf.mxu0 }
 0x270   : > { %1353 = vst [vmem:[%s3521_s9 + $0x228] sm:$0xff] %v1263_v31  ;;  %v1258_v38 = vadd.f32 %v3516_v48, %v1257_v36  ;;  %v2733_v30 = vpop.f32.mrf.mxu1 }
 0x271   : > { %v1608_v39 = vadd.f32 %v2733_v30, %v3516_v48  ;;  %v2696_v40 = vpop.f32.mrf.mxu0 }
 0x272   : > { %1352 = vst [vmem:[%s3521_s9 + $0x208] sm:$0xff] %v1258_v38  ;;  %v1273_v43 = vadd.f32 %v2696_v40, %v3516_v48  ;;  %v1602_v44 = vpop.f32.mrf.mxu1 }
 0x273   : > { %1730 = vst [vmem:[%s3521_s9 + $0x130] sm:$0xff] %v1608_v39  ;;  %v1603_v45 = vadd.f32 %v3516_v48, %v1602_v44  ;;  %v1267_v41 = vpop.f32.mrf.mxu0 }
 0x274   : > { %1355 = vst [vmem:[%s3521_s9 + $0x268] sm:$0xff] %v1273_v43  ;;  %v1268_v47 = vadd.f32 %v3516_v48, %v1267_v41 }
 0x275   : > { %1729 = vst [vmem:[%s3521_s9 + $0x110] sm:$0xff] %v1603_v45  ;;  %v2699_v49 = vpop.f32.mrf.mxu0 }
 0x276   : > { %1354 = vst [vmem:[%s3521_s9 + $0x248] sm:$0xff] %v1268_v47  ;;  %v1283_v50 = vadd.f32 %v2699_v49, %v3516_v48 }
 0x277   : > { %v1277_v51 = vpop.f32.mrf.mxu0 }
 0x278   : > { %1357 = vst [vmem:[%s3521_s9 + $0x2a8] sm:$0xff] %v1283_v50  ;;  %v1278_v52 = vadd.f32 %v3516_v48, %v1277_v51  ;;  %v2736_v46 = vpop.f32.mrf.mxu1 }
 0x279   : > { %v1618_v53 = vadd.f32 %v2736_v46, %v3516_v48  ;;  %v2702_v54 = vpop.f32.mrf.mxu0 }
 0x27a   : > { %1356 = vst [vmem:[%s3521_s9 + $0x288] sm:$0xff] %v1278_v52  ;;  %v1293_v56 = vadd.f32 %v2702_v54, %v3516_v48  ;;  %v1612_v57 = vpop.f32.mrf.mxu1 }
 0x27b   : > { %1732 = vst [vmem:[%s3521_s9 + $0x170] sm:$0xff] %v1618_v53  ;;  %v1613_v58 = vadd.f32 %v3516_v48, %v1612_v57  ;;  %v1287_v59 = vpop.f32.mrf.mxu0 }
 0x27c   : > { %1359 = vst [vmem:[%s3521_s9 + $0x2e8] sm:$0xff] %v1293_v56  ;;  %v1288_v55 = vadd.f32 %v3516_v48, %v1287_v59 }
 0x27d   : > { %1731 = vst [vmem:[%s3521_s9 + $0x150] sm:$0xff] %v1613_v58  ;;  %v2705_v61 = vpop.f32.mrf.mxu0 }
 0x27e   : > { %1358 = vst [vmem:[%s3521_s9 + $0x2c8] sm:$0xff] %v1288_v55  ;;  %v1303_v60 = vadd.f32 %v2705_v61, %v3516_v48 }
 0x27f   : > { %v1297_v62 = vpop.f32.mrf.mxu0 }
 0x280   : > { %1361 = vst [vmem:[%s3521_s9 + $0x328] sm:$0xff] %v1303_v60  ;;  %v1298_v63 = vadd.f32 %v3516_v48, %v1297_v62  ;;  %v2739_v12 = vpop.f32.mrf.mxu1 }
 0x281   : > { %v1628_v1 = vadd.f32 %v2739_v12, %v3516_v48  ;;  %v2708_v3 = vpop.f32.mrf.mxu0 }
 0x282   : > { %1360 = vst [vmem:[%s3521_s9 + $0x308] sm:$0xff] %v1298_v63  ;;  %v1313_v6 = vadd.f32 %v2708_v3, %v3516_v48  ;;  %v1622_v7 = vpop.f32.mrf.mxu1 }
 0x283   : > { %1734 = vst [vmem:[%s3521_s9 + $0x1b0] sm:$0xff] %v1628_v1  ;;  %v1623_v4 = vadd.f32 %v3516_v48, %v1622_v7  ;;  %v1307_v8 = vpop.f32.mrf.mxu0 }
 0x284   : > { %1363 = vst [vmem:[%s3521_s9 + $0x368] sm:$0xff] %v1313_v6  ;;  %v1308_v19 = vadd.f32 %v3516_v48, %v1307_v8 }
 0x285   : > { %1733 = vst [vmem:[%s3521_s9 + $0x190] sm:$0xff] %v1623_v4  ;;  %v2711_v9 = vpop.f32.mrf.mxu0 }
 0x286   : > { %1362 = vst [vmem:[%s3521_s9 + $0x348] sm:$0xff] %v1308_v19  ;;  %v1323_v11 = vadd.f32 %v2711_v9, %v3516_v48 }
 0x287   : > { %v1317_v13 = vpop.f32.mrf.mxu0 }
 0x288   : > { %1365 = vst [vmem:[%s3521_s9 + $0x3a8] sm:$0xff] %v1323_v11  ;;  %v1318_v33 = vadd.f32 %v3516_v48, %v1317_v13 }
 0x289   : > { %v2714_v2 = vpop.f32.mrf.mxu0 }
 0x28a   : > { %1364 = vst [vmem:[%s3521_s9 + $0x388] sm:$0xff] %v1318_v33  ;;  %v1333_v26 = vadd.f32 %v2714_v2, %v3516_v48 }
 0x28b   : > { %v1327_v14 = vpop.f32.mrf.mxu0 }
 0x28c   : > { %1367 = vst [vmem:[%s3521_s9 + $0x3e8] sm:$0xff] %v1333_v26  ;;  %v1328_v15 = vadd.f32 %v3516_v48, %v1327_v14 }
 0x28d   : > { %v2773_v16 = vpop.f32.mrf.mxu0 }
 0x28e   : > { %1366 = vst [vmem:[%s3521_s9 + $0x3c8] sm:$0xff] %v1328_v15  ;;  %v1953_v24 = vadd.f32 %v2773_v16, %v3516_v48 }
 0x28f   : > { %v1947_v35 = vpop.f32.mrf.mxu0 }
 0x290   : > { %2107 = vst [vmem:[%s3521_s9 + $0x38] sm:$0xff] %v1953_v24  ;;  %v1948_v37 = vadd.f32 %v3516_v48, %v1947_v35 }
 0x291   : > { %v2776_v0 = vpop.f32.mrf.mxu0 }
 0x292   : > { %2106 = vst [vmem:[%s3521_s9 + $0x18] sm:$0xff] %v1948_v37  ;;  %v1963_v34 = vadd.f32 %v2776_v0, %v3516_v48 }
 0x293   : > { %v1957_v42 = vpop.f32.mrf.mxu0 }
 0x294   : > { %2109 = vst [vmem:[%s3521_s9 + $0x78] sm:$0xff] %v1963_v34  ;;  %v1958_v32 = vadd.f32 %v3516_v48, %v1957_v42 }
 0x295   : > { %v2779_v20 = vpop.f32.mrf.mxu0 }
 0x296   : > { %2108 = vst [vmem:[%s3521_s9 + $0x58] sm:$0xff] %v1958_v32  ;;  %v1973_v17 = vadd.f32 %v2779_v20, %v3516_v48 }
 0x297   : > { %v1967_v10 = vpop.f32.mrf.mxu0 }
 0x298   : > { %2111 = vst [vmem:[%s3521_s9 + $0xb8] sm:$0xff] %v1973_v17  ;;  %v1968_v5 = vadd.f32 %v3516_v48, %v1967_v10 }
 0x299   : > { %v2782_v18 = vpop.f32.mrf.mxu0 }
 0x29a   : > { %2110 = vst [vmem:[%s3521_s9 + $0x98] sm:$0xff] %v1968_v5  ;;  %v1983_v23 = vadd.f32 %v2782_v18, %v3516_v48 }
 0x29b   : > { %v1977_v25 = vpop.f32.mrf.mxu0 }
 0x29c   : > { %2113 = vst [vmem:[%s3521_s9 + $0xf8] sm:$0xff] %v1983_v23  ;;  %v1978_v21 = vadd.f32 %v3516_v48, %v1977_v25 }
 0x29d   : > { %v2785_v27 = vpop.f32.mrf.mxu0 }
 0x29e   : > { %2112 = vst [vmem:[%s3521_s9 + $0xd8] sm:$0xff] %v1978_v21  ;;  %v1993_v22 = vadd.f32 %v2785_v27, %v3516_v48 }
 0x29f   : > { %v1987_v28 = vpop.f32.mrf.mxu0 }
 0x2a0   : > { %2115 = vst [vmem:[%s3521_s9 + $0x138] sm:$0xff] %v1993_v22  ;;  %v1988_v29 = vadd.f32 %v3516_v48, %v1987_v28 }
 0x2a1   : > { %v2788_v31 = vpop.f32.mrf.mxu0 }
 0x2a2   : > { %2114 = vst [vmem:[%s3521_s9 + $0x118] sm:$0xff] %v1988_v29  ;;  %v2003_v36 = vadd.f32 %v2788_v31, %v3516_v48 }
 0x2a3   : > { %v1997_v38 = vpop.f32.mrf.mxu0 }
 0x2a4   : > { %2117 = vst [vmem:[%s3521_s9 + $0x178] sm:$0xff] %v2003_v36  ;;  %v1998_v30 = vadd.f32 %v3516_v48, %v1997_v38 }
 0x2a5   : > { %v2791_v39 = vpop.f32.mrf.mxu0 }
 0x2a6   : > { %2116 = vst [vmem:[%s3521_s9 + $0x158] sm:$0xff] %v1998_v30  ;;  %v2013_v40 = vadd.f32 %v2791_v39, %v3516_v48 }
 0x2a7   : > { %v2007_v43 = vpop.f32.mrf.mxu0 }
 0x2a8   : > { %2119 = vst [vmem:[%s3521_s9 + $0x1b8] sm:$0xff] %v2013_v40  ;;  %v2008_v44 = vadd.f32 %v3516_v48, %v2007_v43 }
 0x2a9   : > { %v2742_v45 = vpop.f32.mrf.mxu1 }
 0x2aa   : > { %v2794_v41 = vpop.f32.mrf.mxu0  ;;  %2118 = vst [vmem:[%s3521_s9 + $0x198] sm:$0xff] %v2008_v44  ;;  %v1638_v47 = vadd.f32 %v2742_v45, %v3516_v48 }
 0x2ab   : > { %v2023_v49 = vadd.f32 %v2794_v41, %v3516_v48  ;;  %v1632_v50 = vpop.f32.mrf.mxu1 }
 0x2ac   : > { %v2017_v51 = vpop.f32.mrf.mxu0  ;;  %1736 = vst [vmem:[%s3521_s9 + $0x1f0] sm:$0xff] %v1638_v47  ;;  %v1633_v52 = vadd.f32 %v3516_v48, %v1632_v50 }
 0x2ad   : > { %2121 = vst [vmem:[%s3521_s9 + $0x1f8] sm:$0xff] %v2023_v49  ;;  %v2018_v46 = vadd.f32 %v3516_v48, %v2017_v51  ;;  %v2745_v53 = vpop.f32.mrf.mxu1 }
 0x2ae   : > { %v2797_v54 = vpop.f32.mrf.mxu0  ;;  %1735 = vst [vmem:[%s3521_s9 + $0x1d0] sm:$0xff] %v1633_v52  ;;  %v1648_v56 = vadd.f32 %v2745_v53, %v3516_v48 }
 0x2af   : > { %2120 = vst [vmem:[%s3521_s9 + $0x1d8] sm:$0xff] %v2018_v46  ;;  %v2033_v57 = vadd.f32 %v2797_v54, %v3516_v48  ;;  %v1642_v58 = vpop.f32.mrf.mxu1  ;;  %v2865_v46 = vld [vmem:[%s3967_s4] ss:$0 sm:$0xff] }
 0x2b0   : > { %v2027_v59 = vpop.f32.mrf.mxu0  ;;  %1738 = vst [vmem:[%s3521_s9 + $0x230] sm:$0xff] %v1648_v56  ;;  %v1643_v55 = vadd.f32 %v3516_v48, %v1642_v58 }
 0x2b1   : > { %2123 = vst [vmem:[%s3521_s9 + $0x238] sm:$0xff] %v2033_v57  ;;  %v2028_v61 = vadd.f32 %v3516_v48, %v2027_v59  ;;  %v2748_v60 = vpop.f32.mrf.mxu1 }
 0x2b2   : > { %v2800_v62 = vpop.f32.mrf.mxu0  ;;  %1737 = vst [vmem:[%s3521_s9 + $0x210] sm:$0xff] %v1643_v55  ;;  %v1658_v63 = vadd.f32 %v2748_v60, %v3516_v48 }
 0x2b3   : > { %2122 = vst [vmem:[%s3521_s9 + $0x218] sm:$0xff] %v2028_v61  ;;  %v2043_v12 = vadd.f32 %v2800_v62, %v3516_v48  ;;  %v1652_v1 = vpop.f32.mrf.mxu1 }
 0x2b4   : > { %v2037_v3 = vpop.f32.mrf.mxu0  ;;  %1740 = vst [vmem:[%s3521_s9 + $0x270] sm:$0xff] %v1658_v63  ;;  %v1653_v6 = vadd.f32 %v3516_v48, %v1652_v1 }
 0x2b5   : > { %2125 = vst [vmem:[%s3521_s9 + $0x278] sm:$0xff] %v2043_v12  ;;  %v2038_v7 = vadd.f32 %v3516_v48, %v2037_v3  ;;  %v2751_v4 = vpop.f32.mrf.mxu1 }
 0x2b6   : > { %v2803_v8 = vpop.f32.mrf.mxu0  ;;  %1739 = vst [vmem:[%s3521_s9 + $0x250] sm:$0xff] %v1653_v6  ;;  %v1668_v19 = vadd.f32 %v2751_v4, %v3516_v48 }
 0x2b7   : > { %2124 = vst [vmem:[%s3521_s9 + $0x258] sm:$0xff] %v2038_v7  ;;  %v2053_v9 = vadd.f32 %v2803_v8, %v3516_v48  ;;  %v1662_v11 = vpop.f32.mrf.mxu1 }
 0x2b8   : > { %v2047_v13 = vpop.f32.mrf.mxu0  ;;  %1742 = vst [vmem:[%s3521_s9 + $0x2b0] sm:$0xff] %v1668_v19  ;;  %v1663_v33 = vadd.f32 %v3516_v48, %v1662_v11 }
 0x2b9   : > { %2127 = vst [vmem:[%s3521_s9 + $0x2b8] sm:$0xff] %v2053_v9  ;;  %v2048_v2 = vadd.f32 %v3516_v48, %v2047_v13  ;;  %v2754_v26 = vpop.f32.mrf.mxu1 }
 0x2ba   : > { %v2806_v14 = vpop.f32.mrf.mxu0  ;;  %1741 = vst [vmem:[%s3521_s9 + $0x290] sm:$0xff] %v1663_v33  ;;  %v1678_v15 = vadd.f32 %v2754_v26, %v3516_v48 }
 0x2bb   : > { %2126 = vst [vmem:[%s3521_s9 + $0x298] sm:$0xff] %v2048_v2  ;;  %v2063_v16 = vadd.f32 %v2806_v14, %v3516_v48  ;;  %v1672_v24 = vpop.f32.mrf.mxu1 }
 0x2bc   : > { %v2057_v35 = vpop.f32.mrf.mxu0  ;;  %1744 = vst [vmem:[%s3521_s9 + $0x2f0] sm:$0xff] %v1678_v15  ;;  %v1673_v37 = vadd.f32 %v3516_v48, %v1672_v24 }
 0x2bd   : > { %2129 = vst [vmem:[%s3521_s9 + $0x2f8] sm:$0xff] %v2063_v16  ;;  %v2058_v0 = vadd.f32 %v3516_v48, %v2057_v35  ;;  %v2757_v34 = vpop.f32.mrf.mxu1 }
 0x2be   : > { %v2809_v42 = vpop.f32.mrf.mxu0  ;;  %1743 = vst [vmem:[%s3521_s9 + $0x2d0] sm:$0xff] %v1673_v37  ;;  %v1688_v32 = vadd.f32 %v2757_v34, %v3516_v48 }
 0x2bf   : > { %2128 = vst [vmem:[%s3521_s9 + $0x2d8] sm:$0xff] %v2058_v0  ;;  %v2073_v20 = vadd.f32 %v2809_v42, %v3516_v48  ;;  %v1682_v17 = vpop.f32.mrf.mxu1 }
 0x2c0   : > { %v2067_v10 = vpop.f32.mrf.mxu0  ;;  %1746 = vst [vmem:[%s3521_s9 + $0x330] sm:$0xff] %v1688_v32  ;;  %v1683_v5 = vadd.f32 %v3516_v48, %v1682_v17 }
 0x2c1   : > { %2131 = vst [vmem:[%s3521_s9 + $0x338] sm:$0xff] %v2073_v20  ;;  %v2068_v18 = vadd.f32 %v3516_v48, %v2067_v10  ;;  %v2760_v23 = vpop.f32.mrf.mxu1 }
 0x2c2   : > { %v2812_v25 = vpop.f32.mrf.mxu0  ;;  %1745 = vst [vmem:[%s3521_s9 + $0x310] sm:$0xff] %v1683_v5  ;;  %v1698_v21 = vadd.f32 %v2760_v23, %v3516_v48 }
 0x2c3   : > { %2130 = vst [vmem:[%s3521_s9 + $0x318] sm:$0xff] %v2068_v18  ;;  %v2083_v27 = vadd.f32 %v2812_v25, %v3516_v48  ;;  %v1692_v22 = vpop.f32.mrf.mxu1 }
 0x2c4   : > { %v2077_v28 = vpop.f32.mrf.mxu0  ;;  %1748 = vst [vmem:[%s3521_s9 + $0x370] sm:$0xff] %v1698_v21  ;;  %v1693_v29 = vadd.f32 %v3516_v48, %v1692_v22 }
 0x2c5   : > { %2133 = vst [vmem:[%s3521_s9 + $0x378] sm:$0xff] %v2083_v27  ;;  %v2078_v31 = vadd.f32 %v3516_v48, %v2077_v28  ;;  %v2763_v36 = vpop.f32.mrf.mxu1 }
 0x2c6   : > { %v2815_v38 = vpop.f32.mrf.mxu0  ;;  %1747 = vst [vmem:[%s3521_s9 + $0x350] sm:$0xff] %v1693_v29  ;;  %v1708_v30 = vadd.f32 %v2763_v36, %v3516_v48 }
 0x2c7   : > { %2132 = vst [vmem:[%s3521_s9 + $0x358] sm:$0xff] %v2078_v31  ;;  %v2093_v39 = vadd.f32 %v2815_v38, %v3516_v48  ;;  %v1702_v40 = vpop.f32.mrf.mxu1 }
 0x2c8   : > { %v2087_v43 = vpop.f32.mrf.mxu0  ;;  %1750 = vst [vmem:[%s3521_s9 + $0x3b0] sm:$0xff] %v1708_v30  ;;  %v1703_v44 = vadd.f32 %v3516_v48, %v1702_v40 }
 0x2c9   : > { %2135 = vst [vmem:[%s3521_s9 + $0x3b8] sm:$0xff] %v2093_v39  ;;  %v2088_v45 = vadd.f32 %v3516_v48, %v2087_v43 }
 0x2ca   : > { %1749 = vst [vmem:[%s3521_s9 + $0x390] sm:$0xff] %v1703_v44 }
 0x2cb   : > { %2134 = vst [vmem:[%s3521_s9 + $0x398] sm:$0xff] %v2088_v45 }
 0x2cc   : > { %v2766_v41 = vpop.f32.mrf.mxu1 }
 0x2cd   : > { %v2818_v47 = vpop.f32.mrf.mxu0  ;;  %v1718_v49 = vadd.f32 %v2766_v41, %v3516_v48 }
 0x2ce   : > { %v2103_v50 = vadd.f32 %v2818_v47, %v3516_v48  ;;  %v1712_v51 = vpop.f32.mrf.mxu1 }
 0x2cf   : > { %v2097_v52 = vpop.f32.mrf.mxu0  ;;  %1752 = vst [vmem:[%s3521_s9 + $0x3f0] sm:$0xff] %v1718_v49  ;;  %v1713_v53 = vadd.f32 %v2865_v46, %v1712_v51 }
 0x2d0   : > { %2137 = vst [vmem:[%s3521_s9 + $0x3f8] sm:$0xff] %v2103_v50  ;;  %v2098_v48 = vadd.f32 %v2865_v46, %v2097_v52 }
 0x2d1   : > { %1751 = vst [vmem:[%s3521_s9 + $0x3d0] sm:$0xff] %v1713_v53 }
 0x2d2   : > { %2136 = vst [vmem:[%s3521_s9 + $0x3d8] sm:$0xff] %v2098_v48 }
 0x2d3   : > { %2879 = shalt.err (!%p2876_p3)
}
 0x2d4   : > { %s2880_s30 = scalar_lea.hbm %s3910_s14, 16384  ;;  %s2884_s8 = scalar_lea.hbm %s3968_s5, 32768 }
 0x2d5   : > { %p2881_p4 = scmp.ne.s32.totalorder %s3910_s14, %s2880_s30  ;;  %p2885_p9 = scmp.lt.s32.totalorder %s3910_s14, %s3968_s5 }
 0x2d6   : > { %p2886_p10 = scmp.lt.s32.totalorder %s2884_s8, %s2880_s30 }
 0x2d7   : > { %p2882_p7 = pnand %p2881_p4, %p3002_p5 }
 0x2d8   : > { %p2887_p11 = por %p2886_p10, %p2885_p9 }
 0x2d9   : > { %p2883_p8 = pneg %p2882_p7 }
 0x2db   : > { %p2888_p12 = pnand %p2887_p11, %p2883_p8 }
 0x2dd   : > { %2891 = shalt.err (!%p2888_p12)
}
 0x2de   : > { %s2932_s12 = smov 512   ;;  %s2933_s13 = smov 32  }
 0x2df   : > { %2821 = dma.vmem_to_hbm [thread:$0]  (%p3002_p5), %s3912_s11, 16384, %s3910_s14, %s3923_s16, %s2932_s12, %s2932_s12, %s2933_s13  }
 0x2e0 PF: > { %p2827_p13 = scmp.ge.s32.totalorder %s2926_s21, 2  ;;  %s2168_s22 = sand.u32 1, %s2914_s18  }
 0x2e1   : > { %s2169_s15 = scalar_lea.sflag [#allocation3], %s2168_s22 }
 0x2e2   : > { %p2824_p0 = pnand %p2827_p13, %p3006_p6 }
 0x2e4   : > { %p2825_p1 = pneg %p2824_p0 }
 0x2e6   : > { %2909 = dma.done.wait (%p2825_p1), %s2169_s15, 16384  }
 0x2e7   : > { %2911 = vsyncadd (%p2825_p1), %s2169_s15, 4294950912  ;;  %p15_p2 = scmp.ge.s32.totalorder %s2989_s24, 4   ;;  %s3971_s18 = smov %s2918_s19 }
 0x2e8   : > { %s3972_s19 = smov %s2922_s20  ;;  %s3973_s20 = smov %s3000_s27 }
 0x2e9   : > { %s3974_s21 = smov %s2989_s24  ;;  %17 = sbr.rel (!%p15_p2) target bundleno = 3 (0x3), region = 75 }
 0x2ee   :  { %2174 = vsyncpa [#allocation3], 1 }
 0x2ef   :  { %2176 = vsyncpa [#allocation3 + $0x1], 1 }

</bundles_post_ra>
